<compile_context>
chip_gen: v6e
topology: v6e:2x2x1
jax: 0.10.0
libtpu: 0.0.40
codegen_flags: <defaults>
</compile_context>

<pallas_src>
import functools

import jax
import jax.numpy as jnp
from jax.experimental import pallas as pl
from jax.experimental.pallas import tpu as pltpu

LN_EPS = 1e-6
_VMEM_BUDGET_BYTES = 40 * 1024 * 1024          # conservative even for v7x (64 MiB)
_VMEM_LIMIT_BYTES = 48 * 1024 * 1024           # explicit, > 32 MiB scoped default


def _mlp_res_kernel(x_ref, gamma_ref, beta_ref, w1_ref, b1_ref, w2_ref, b2_ref,
                    o_ref):
    x = x_ref[...].astype(jnp.float32)                       # (TM, D)

    # ---- LayerNorm over last dim (eps=1e-6), stats in f32 ----
    mean = jnp.mean(x, axis=-1, keepdims=True)
    xc = x - mean
    var = jnp.mean(xc * xc, axis=-1, keepdims=True)
    inv = jax.lax.rsqrt(var + LN_EPS)
    xn = xc * inv * gamma_ref[...] + beta_ref[...]           # (TM, D) f32

    # ---- linear1 + ReLU (dropout1 = identity at inference) ----
    mm_dtype = w1_ref.dtype                                  # bf16 (or f32) MXU operands
    h = jnp.dot(xn.astype(mm_dtype), w1_ref[...],
                preferred_element_type=jnp.float32)          # (TM, H) f32 acc
    h = jnp.maximum(h + b1_ref[...], 0.0)

    # ---- linear2 + ReLU (dropout2 = identity at inference) ----
    y = jnp.dot(h.astype(mm_dtype), w2_ref[...],
                preferred_element_type=jnp.float32)          # (TM, D) f32 acc
    y = jnp.maximum(y + b2_ref[...], 0.0)

    # ---- residual in f32 ----
    o_ref[...] = (x + y).astype(o_ref.dtype)


def _pick_block_rows(n_rows, in_dim, hid_dim, requested, weight_itemsize):
    """Clamp the row tile so (weights + tiles + temporaries) fits the VMEM budget."""
    br = max(8, min(int(requested), ((n_rows + 7) // 8) * 8))
    br = ((br + 7) // 8) * 8
    w_cost = 2 * 2 * in_dim * hid_dim * weight_itemsize      # w1+w2, double-buffered
    while br > 8:
        io_cost = 2 * 2 * br * in_dim * 4                    # x + out tiles, double-buffered
        tmp_cost = br * (3 * in_dim + 2 * hid_dim) * 4       # xn / h / y temporaries (rough)
        if w_cost + io_cost + tmp_cost <= _VMEM_BUDGET_BYTES:
            break
        br = max(8, br // 2)
    return br


@functools.partial(jax.jit, static_argnames=("block_rows", "compute_dtype"))
def mlp_res_block(x, gamma, beta, w1, b1, w2, b2, *,
                  block_rows=256, compute_dtype=jnp.bfloat16):
    """x: (..., in_dim).  w1: (in_dim, hid_dim), b1: (hid_dim,),
    w2: (hid_dim, in_dim), b2: (in_dim,).  (nn.Linear weights pre-transposed.)"""
    orig_shape = x.shape
    in_dim = orig_shape[-1]
    hid_dim = w1.shape[1]

    x2d = x.reshape(-1, in_dim)
    n_rows = x2d.shape[0]

    # MXU operands in compute_dtype (bf16 by default); accumulation stays f32.
    w1c = w1.astype(compute_dtype)
    w2c = w2.astype(compute_dtype)

    # 1-D params as (1, K) rows so they broadcast cleanly from VMEM.
    gamma2 = gamma.reshape(1, in_dim).astype(jnp.float32)
    beta2 = beta.reshape(1, in_dim).astype(jnp.float32)
    b1_2 = b1.reshape(1, hid_dim).astype(jnp.float32)
    b2_2 = b2.reshape(1, in_dim).astype(jnp.float32)

    tm = _pick_block_rows(n_rows, in_dim, hid_dim, block_rows,
                          jnp.dtype(compute_dtype).itemsize)

    # Pad rows to a multiple of the tile (padded rows are computed and dropped;
    # LN of an all-zero row is finite, so no NaN risk).
    n_pad = (-n_rows) % tm
    if n_pad:
        x2d = jnp.pad(x2d, ((0, n_pad), (0, 0)))
    padded_rows = n_rows + n_pad
    grid = (padded_rows // tm,)

    row_spec = pl.BlockSpec((tm, in_dim), lambda i: (i, 0))
    full = lambda r, c: pl.BlockSpec((r, c), lambda i: (0, 0))  # grid-invariant block

    out = pl.pallas_call(
        _mlp_res_kernel,
        out_shape=jax.ShapeDtypeStruct((padded_rows, in_dim), x.dtype),
        grid_spec=pltpu.PrefetchScalarGridSpec(
            num_scalar_prefetch=0,
            grid=grid,
            in_specs=[
                row_spec,                 # x rows
                full(1, in_dim),          # gamma
                full(1, in_dim),          # beta
                full(in_dim, hid_dim),    # w1 (in, hid)
                full(1, hid_dim),         # b1
                full(hid_dim, in_dim),    # w2 (hid, in)
                full(1, in_dim),          # b2
            ],
            out_specs=row_spec,
        ),
        compiler_params=pltpu.CompilerParams(
            dimension_semantics=("parallel",),          # megacore-shardable row axis
            vmem_limit_bytes=_VMEM_LIMIT_BYTES,
        ),
    )(x2d, gamma2, beta2, w1c, b1_2, w2c, b2_2)

    if n_pad:
        out = out[:n_rows]
    return out.reshape(orig_shape)


def _reference(x, gamma, beta, w1, b1, w2, b2):
    mean = jnp.mean(x, axis=-1, keepdims=True)
    var = jnp.mean((x - mean) ** 2, axis=-1, keepdims=True)
    xn = (x - mean) / jnp.sqrt(var + LN_EPS) * gamma + beta
    h = jnp.maximum(xn @ w1 + b1, 0.0)
    y = jnp.maximum(h @ w2 + b2, 0.0)
    return x + y


if __name__ == "__main__":
    # Small, lane-dense shapes consistent with the module (tokens of width in_dim).
    # n_rows = 4*200 = 800 -> exercises row padding with the 256-row tile.
    batch, seq, in_dim, hid_dim = 4, 200, 128, 256

    key = jax.random.PRNGKey(0)
    kx, kg, kb, kw1, kb1, kw2, kb2 = jax.random.split(key, 7)

    x = jax.random.normal(kx, (batch, seq, in_dim), jnp.float32)

    # Deterministic synthetic parameters (shapes match nn.LayerNorm / nn.Linear;
    # nn.Linear stores (out, in) — pre-transposed here to (in, out)).
    gamma = 1.0 + 0.1 * jax.random.normal(kg, (in_dim,), jnp.float32)
    beta = 0.1 * jax.random.normal(kb, (in_dim,), jnp.float32)
    w1 = jax.random.normal(kw1, (in_dim, hid_dim), jnp.float32) / jnp.sqrt(in_dim)
    b1 = 0.1 * jax.random.normal(kb1, (hid_dim,), jnp.float32)
    w2 = jax.random.normal(kw2, (hid_dim, in_dim), jnp.float32) / jnp.sqrt(hid_dim)
    b2 = 0.1 * jax.random.normal(kb2, (in_dim,), jnp.float32)

    # TODO(synk): dropout layers are treated as identity (inference mode);
    # training-mode stochastic dropout would use pltpu.prng_* inside the kernel.

    ref = _reference(x, gamma, beta, w1, b1, w2, b2)

    # Fast path: bf16 MXU operands, f32 accumulation.
    out_bf16 = mlp_res_block(x, gamma, beta, w1, b1, w2, b2,
                             block_rows=256, compute_dtype=jnp.bfloat16)
    out_bf16 = jax.block_until_ready(out_bf16)
    assert out_bf16.shape == x.shape
    assert jnp.allclose(out_bf16, ref, atol=2e-2, rtol=2e-2), "bf16 path mismatch"

    # Full-precision path for a tight numerical check.
    out_f32 = mlp_res_block(x, gamma, beta, w1, b1, w2, b2,
                            block_rows=256, compute_dtype=jnp.float32)
    out_f32 = jax.block_until_ready(out_f32)
    assert jnp.allclose(out_f32, ref, atol=2e-4, rtol=2e-4), "f32 path mismatch"

    print("KERNEL_OK")
</pallas_src>

<mosaic_0001>
module attributes {stable_mosaic.version = 11 : i64} {
  func.func @_mlp_res_kernel(%arg0: i32, %arg1: memref<256x128xf32, #tpu.memory_space<vmem>>, %arg2: memref<1x128xf32, #tpu.memory_space<vmem>>, %arg3: memref<1x128xf32, #tpu.memory_space<vmem>>, %arg4: memref<128x256xbf16, #tpu.memory_space<vmem>>, %arg5: memref<1x256xf32, #tpu.memory_space<vmem>>, %arg6: memref<256x128xbf16, #tpu.memory_space<vmem>>, %arg7: memref<1x128xf32, #tpu.memory_space<vmem>>, %arg8: memref<256x128xf32, #tpu.memory_space<vmem>>) attributes {dimension_semantics = [#tpu.dimension_semantics<parallel>], iteration_bounds = array<i64: 4>, scalar_prefetch = 0 : i64, scratch_operands = 0 : i64, tpu.core_type = #tpu.core_type<tc>, window_params = [{transform_indices = @transform_0, window_bounds = array<i64: 256, 128>}, {pipeline_mode = #tpu.pipeline_mode<synchronous>, transform_indices = @transform_1, window_bounds = array<i64: 1, 128>}, {pipeline_mode = #tpu.pipeline_mode<synchronous>, transform_indices = @transform_2, window_bounds = array<i64: 1, 128>}, {pipeline_mode = #tpu.pipeline_mode<synchronous>, transform_indices = @transform_3, window_bounds = array<i64: 128, 256>}, {pipeline_mode = #tpu.pipeline_mode<synchronous>, transform_indices = @transform_4, window_bounds = array<i64: 1, 256>}, {pipeline_mode = #tpu.pipeline_mode<synchronous>, transform_indices = @transform_5, window_bounds = array<i64: 256, 128>}, {pipeline_mode = #tpu.pipeline_mode<synchronous>, transform_indices = @transform_6, window_bounds = array<i64: 1, 128>}, {transform_indices = @transform_7, window_bounds = array<i64: 256, 128>}]} {
    %c0 = arith.constant 0 : index
    %c0_0 = arith.constant 0 : index
    %0 = vector.load %arg1[%c0, %c0_0] : memref<256x128xf32, #tpu.memory_space<vmem>>, vector<256x128xf32>
    %cst = arith.constant dense<0.000000e+00> : vector<256xf32>
    %1 = vector.multi_reduction <add>, %0, %cst [1] : vector<256x128xf32> to vector<256xf32>
    %2 = vector.shape_cast %1 : vector<256xf32> to vector<256x1xf32>
    %cst_1 = arith.constant 1.280000e+02 : f32
    %3 = vector.broadcast %cst_1 : f32 to vector<256x1xf32>
    %4 = arith.divf %2, %3 : vector<256x1xf32>
    %5 = vector.broadcast %4 : vector<256x1xf32> to vector<256x128xf32>
    %6 = arith.subf %0, %5 : vector<256x128xf32>
    %7 = arith.mulf %6, %6 : vector<256x128xf32>
    %cst_2 = arith.constant dense<0.000000e+00> : vector<256xf32>
    %8 = vector.multi_reduction <add>, %7, %cst_2 [1] : vector<256x128xf32> to vector<256xf32>
    %9 = vector.shape_cast %8 : vector<256xf32> to vector<256x1xf32>
    %cst_3 = arith.constant 1.280000e+02 : f32
    %10 = vector.broadcast %cst_3 : f32 to vector<256x1xf32>
    %11 = arith.divf %9, %10 : vector<256x1xf32>
    %cst_4 = arith.constant 9.99999997E-7 : f32
    %12 = vector.broadcast %cst_4 : f32 to vector<256x1xf32>
    %13 = arith.addf %11, %12 : vector<256x1xf32>
    %14 = math.rsqrt %13 : vector<256x1xf32>
    %15 = vector.broadcast %14 : vector<256x1xf32> to vector<256x128xf32>
    %16 = arith.mulf %6, %15 : vector<256x128xf32>
    %c0_5 = arith.constant 0 : index
    %c0_6 = arith.constant 0 : index
    %17 = vector.load %arg2[%c0_5, %c0_6] : memref<1x128xf32, #tpu.memory_space<vmem>>, vector<1x128xf32>
    %18 = vector.broadcast %17 : vector<1x128xf32> to vector<256x128xf32>
    %19 = arith.mulf %16, %18 : vector<256x128xf32>
    %c0_7 = arith.constant 0 : index
    %c0_8 = arith.constant 0 : index
    %20 = vector.load %arg3[%c0_7, %c0_8] : memref<1x128xf32, #tpu.memory_space<vmem>>, vector<1x128xf32>
    %21 = vector.broadcast %20 : vector<1x128xf32> to vector<256x128xf32>
    %22 = arith.addf %19, %21 : vector<256x128xf32>
    %23 = arith.truncf %22 : vector<256x128xf32> to vector<256x128xbf16>
    %c0_9 = arith.constant 0 : index
    %c0_10 = arith.constant 0 : index
    %24 = vector.load %arg4[%c0_9, %c0_10] : memref<128x256xbf16, #tpu.memory_space<vmem>>, vector<128x256xbf16>
    %cst_11 = arith.constant dense<0.000000e+00> : vector<256x256xf32>
    %25 = tpu.matmul %23, %24, %cst_11 {dimension_numbers = #tpu.dot_dimension_numbers<[1], [0], [0], [1], [0, 0, 1, 1], [], []>} : vector<256x128xbf16>, vector<128x256xbf16>, vector<256x256xf32> -> vector<256x256xf32>
    %c0_12 = arith.constant 0 : index
    %c0_13 = arith.constant 0 : index
    %26 = vector.load %arg5[%c0_12, %c0_13] : memref<1x256xf32, #tpu.memory_space<vmem>>, vector<1x256xf32>
    %27 = vector.broadcast %26 : vector<1x256xf32> to vector<256x256xf32>
    %28 = arith.addf %25, %27 : vector<256x256xf32>
    %cst_14 = arith.constant 0.000000e+00 : f32
    %29 = vector.broadcast %cst_14 : f32 to vector<256x256xf32>
    %30 = arith.maximumf %28, %29 : vector<256x256xf32>
    %31 = arith.truncf %30 : vector<256x256xf32> to vector<256x256xbf16>
    %c0_15 = arith.constant 0 : index
    %c0_16 = arith.constant 0 : index
    %32 = vector.load %arg6[%c0_15, %c0_16] : memref<256x128xbf16, #tpu.memory_space<vmem>>, vector<256x128xbf16>
    %cst_17 = arith.constant dense<0.000000e+00> : vector<256x128xf32>
    %33 = tpu.matmul %31, %32, %cst_17 {dimension_numbers = #tpu.dot_dimension_numbers<[1], [0], [0], [1], [0, 0, 1, 1], [], []>} : vector<256x256xbf16>, vector<256x128xbf16>, vector<256x128xf32> -> vector<256x128xf32>
    %c0_18 = arith.constant 0 : index
    %c0_19 = arith.constant 0 : index
    %34 = vector.load %arg7[%c0_18, %c0_19] : memref<1x128xf32, #tpu.memory_space<vmem>>, vector<1x128xf32>
    %35 = vector.broadcast %34 : vector<1x128xf32> to vector<256x128xf32>
    %36 = arith.addf %33, %35 : vector<256x128xf32>
    %cst_20 = arith.constant 0.000000e+00 : f32
    %37 = vector.broadcast %cst_20 : f32 to vector<256x128xf32>
    %38 = arith.maximumf %36, %37 : vector<256x128xf32>
    %39 = arith.addf %0, %38 : vector<256x128xf32>
    %c0_21 = arith.constant 0 : index
    %c0_22 = arith.constant 0 : index
    %40 = vector.load %arg8[%c0_21, %c0_22] : memref<256x128xf32, #tpu.memory_space<vmem>>, vector<256x128xf32>
    tpu.vector_store %arg8[%c0_21, %c0_22], %39 {strides = array<i32>} : memref<256x128xf32, #tpu.memory_space<vmem>>, vector<256x128xf32>,
    return
  }
  func.func @transform_0(%arg0: i32) -> (i32, i32) {
    %c0_i32 = arith.constant 0 : i32
    %c0_i32_0 = arith.constant 0 : i32
    return %arg0, %c0_i32 : i32, i32
  }
  func.func @transform_1(%arg0: i32) -> (i32, i32) {
    %c0_i32 = arith.constant 0 : i32
    %c0_i32_0 = arith.constant 0 : i32
    %c0_i32_1 = arith.constant 0 : i32
    return %c0_i32, %c0_i32_0 : i32, i32
  }
  func.func @transform_2(%arg0: i32) -> (i32, i32) {
    %c0_i32 = arith.constant 0 : i32
    %c0_i32_0 = arith.constant 0 : i32
    %c0_i32_1 = arith.constant 0 : i32
    return %c0_i32, %c0_i32_0 : i32, i32
  }
  func.func @transform_3(%arg0: i32) -> (i32, i32) {
    %c0_i32 = arith.constant 0 : i32
    %c0_i32_0 = arith.constant 0 : i32
    %c0_i32_1 = arith.constant 0 : i32
    return %c0_i32, %c0_i32_0 : i32, i32
  }
  func.func @transform_4(%arg0: i32) -> (i32, i32) {
    %c0_i32 = arith.constant 0 : i32
    %c0_i32_0 = arith.constant 0 : i32
    %c0_i32_1 = arith.constant 0 : i32
    return %c0_i32, %c0_i32_0 : i32, i32
  }
  func.func @transform_5(%arg0: i32) -> (i32, i32) {
    %c0_i32 = arith.constant 0 : i32
    %c0_i32_0 = arith.constant 0 : i32
    %c0_i32_1 = arith.constant 0 : i32
    return %c0_i32, %c0_i32_0 : i32, i32
  }
  func.func @transform_6(%arg0: i32) -> (i32, i32) {
    %c0_i32 = arith.constant 0 : i32
    %c0_i32_0 = arith.constant 0 : i32
    %c0_i32_1 = arith.constant 0 : i32
    return %c0_i32, %c0_i32_0 : i32, i32
  }
  func.func @transform_7(%arg0: i32) -> (i32, i32) {
    %c0_i32 = arith.constant 0 : i32
    %c0_i32_0 = arith.constant 0 : i32
    return %arg0, %c0_i32 : i32, i32
  }
}

</mosaic_0001>

<bundles_post_ra>
// kernel: mlp_res_block.1
= control target key start
LH: loop header
LB: loop body
LE: loop exit
PB: predicated region body
PF: predicated region fallthrough
CT: control target
= control target key end

     0   :  { %s1959_s24 = smov 0   ;;  %s2645_s0 = inlined_call_operand.vmem [shape: f32[1024,128], index: 0, kind: input, shape index: {}]   ;;  %s2646_s1 = inlined_call_operand.vmem [shape: f32[1,128], index: 1, kind: input, shape index: {}]   ;;  %s2647_s2 = inlined_call_operand.vmem [shape: f32[1,128], index: 2, kind: input, shape index: {}]   ;;  %s2648_s3 = inlined_call_operand.vmem [shape: bf16[128,256], index: 3, kind: input, shape index: {}]   ;;  %s2649_s4 = inlined_call_operand.vmem [shape: f32[1,256], index: 4, kind: input, shape index: {}]   ;;  %s2650_s5 = inlined_call_operand.vmem [shape: bf16[256,128], index: 5, kind: input, shape index: {}]   ;;  %s2651_s6 = inlined_call_operand.vmem [shape: f32[1,128], index: 6, kind: input, shape index: {}]   ;;  %s2652_s7 = inlined_call_operand.vmem [shape: f32[1024,128], index: 7, kind: output, shape index: {}]  }
   0x1 LB: > { %s1607_s25 = sadd.s32 4294967295, %s1916_s24   ;;  %p1611_p0 = scmp.ge.s32.totalorder %s1916_s24, 1  ;;  %s1916_s24 = sphi %s1959_s24, %s17_s24  }
   0x2   : > { %p238_p1 = scmp.lt.s32.totalorder %s1916_s24, 5 }
   0x4   : > { %p239_p2 = pnand %p1611_p0, %p238_p1 }
   0x5   : > { %s1612_s26 = sshll.u32 (!%p239_p2), %s1607_s25, 5 }
   0x6   : > { %242 = sbr.rel (%p239_p2) target bundleno = 929 (0x3a1), region = 48  ;;  %p271_p3 = scmp.lt.s32.totalorder (!%p239_p2), %s1612_s26, 127 }
   0xb   : > { %s2654_s26 = smov (!%p271_p3, %s1612_s26), 127  ;;  %v1774_v20 = vld [vmem:[%s2648_s3 + $0x74] ss:$8 sps:$4 sm:$0xff]   ;;  %v1776_v21 = vld [vmem:[%s2648_s3 + $0x70] ss:$8 sps:$4 sm:$0xff]  }
   0xc   : > { %s1613_s27 = sshll.u32 %s2654_s26, 3  ;;  %870 = vmatprep.subr.bf16.mxu0 %v1774_v20  ;;  %v1777_v47 = vld [vmem:[%s2648_s3 + $0x64] ss:$8 sps:$4 sm:$0xff]   ;;  %v1779_v48 = vld [vmem:[%s2648_s3 + $0x60] ss:$8 sps:$4 sm:$0xff]  }
   0xd   : > { %s1975_s30 = scalar_lea.vmem %s2645_s0, %s1613_s27  ;;  %871 = vmatpush1.bf16.msra.mxu0 %v1776_v21  ;;  %v1780_v54 = vld [vmem:[%s2648_s3 + $0x54] ss:$8 sps:$4 sm:$0xff]   ;;  %v1782_v55 = vld [vmem:[%s2648_s3 + $0x50] ss:$8 sps:$4 sm:$0xff]   ;;  %v1783_v61 = vld [vmem:[%s2648_s3 + $0x44] ss:$8 sps:$4 sm:$0xff]   ;;  %s2545_s28 = scalar_lea.vmem %s2652_s7, %s1613_s27 }
   0xe   : > { %v283_v0 = vld [vmem:[%s1975_s30] sm:$0xff]  ;;  %v285_v1 = vld [vmem:[%s1975_s30 + $0x10] sm:$0xff]  ;;  %v284_v2 = vld [vmem:[%s1975_s30 + $0x8] sm:$0xff]  ;;  %872 = vmatprep.subr.bf16.mxu0 %v1777_v47 }
   0xf   : > { %315 = vadd.xlane.f32.xlu0 %v283_v0  ;;  %319 = vadd.xlane.f32.xlu1 %v285_v1  ;;  %v286_v3 = vld [vmem:[%s1975_s30 + $0x18] sm:$0xff]  ;;  %v287_v4 = vld [vmem:[%s1975_s30 + $0x20] sm:$0xff]  ;;  %v1983_v5 = vld [vmem:[%s1975_s30 + $0x28] sm:$0xff] }
  0x10   : > { %v1986_v6 = vld [vmem:[%s1975_s30 + $0x30] sm:$0xff]  ;;  %v1989_v7 = vld [vmem:[%s1975_s30 + $0x38] sm:$0xff]  ;;  %v1993_v8 = vld [vmem:[%s1975_s30 + $0x40] sm:$0xff] }
  0x11   : > { %v1996_v9 = vld [vmem:[%s1975_s30 + $0x48] sm:$0xff]  ;;  %v2003_v10 = vld [vmem:[%s1975_s30 + $0x50] sm:$0xff]  ;;  %v2006_v11 = vld [vmem:[%s1975_s30 + $0x58] sm:$0xff]  ;;  %873 = vmatpush1.bf16.msra.mxu0 %v1779_v48 }
  0x12   : > { %v2011_v12 = vld [vmem:[%s1975_s30 + $0x60] sm:$0xff]  ;;  %v2014_v13 = vld [vmem:[%s1975_s30 + $0x68] sm:$0xff]  ;;  %v2019_v14 = vld [vmem:[%s1975_s30 + $0x70] sm:$0xff]  ;;  %874 = vmatprep.subr.bf16.mxu0 %v1780_v54 }
  0x13   : > { %317 = vadd.xlane.f32.xlu0 %v284_v2  ;;  %321 = vadd.xlane.f32.xlu1 %v286_v3  ;;  %v2022_v15 = vld [vmem:[%s1975_s30 + $0x78] sm:$0xff]  ;;  %v2027_v16 = vld [vmem:[%s1975_s30 + $0x80] sm:$0xff]  ;;  %v2030_v17 = vld [vmem:[%s1975_s30 + $0x88] sm:$0xff] }
  0x14   : > { %v2035_v18 = vld [vmem:[%s1975_s30 + $0x90] sm:$0xff]  ;;  %v2038_v19 = vld [vmem:[%s1975_s30 + $0x98] sm:$0xff]  ;;  %v2057_v34 = vld [vmem:[%s1975_s30 + $0xa0] sm:$0xff] }
  0x15   : > { %v2067_v40 = vld [vmem:[%s1975_s30 + $0xa8] sm:$0xff]  ;;  %v2075_v45 = vld [vmem:[%s1975_s30 + $0xb0] sm:$0xff]  ;;  %v2090_v52 = vld [vmem:[%s1975_s30 + $0xb8] sm:$0xff]  ;;  %875 = vmatpush1.bf16.msra.mxu0 %v1782_v55  ;;  %v1918_v55 = vmov 0  }
  0x16   : > { %v2105_v59 = vld [vmem:[%s1975_s30 + $0xc0] sm:$0xff]  ;;  %876 = vmatprep.subr.bf16.mxu0 %v1783_v61  ;;  %902 = vmatprep.mubr.bf16.mxu0 %v1918_v55 }
  0x17   : > { %323 = vadd.xlane.f32.xlu0 %v287_v4  ;;  %325 = vadd.xlane.f32.xlu1 %v1983_v5  ;;  %v1785_v62 = vld [vmem:[%s2648_s3 + $0x40] ss:$8 sps:$4 sm:$0xff]  }
  0x19   : > { %877 = vmatpush1.bf16.msra.mxu0 %v1785_v62 }
  0x1b   : > { %327 = vadd.xlane.f32.xlu0 %v1986_v6  ;;  %329 = vadd.xlane.f32.xlu1 %v1989_v7 }
  0x1f   : > { %331 = vadd.xlane.f32.xlu0 %v1993_v8  ;;  %333 = vadd.xlane.f32.xlu1 %v1996_v9 }
  0x23   : > { %335 = vadd.xlane.f32.xlu0 %v2003_v10  ;;  %337 = vadd.xlane.f32.xlu1 %v2006_v11 }
  0x27   : > { %339 = vadd.xlane.f32.xlu0 %v2011_v12  ;;  %341 = vadd.xlane.f32.xlu1 %v2014_v13 }
  0x2b   : > { %343 = vadd.xlane.f32.xlu0 %v2019_v14  ;;  %345 = vadd.xlane.f32.xlu1 %v2022_v15 }
  0x2f   : > { %347 = vadd.xlane.f32.xlu0 %v2027_v16  ;;  %349 = vadd.xlane.f32.xlu1 %v2030_v17 }
  0x33   : > { %351 = vadd.xlane.f32.xlu0 %v2035_v18  ;;  %353 = vadd.xlane.f32.xlu1 %v2038_v19 }
  0x98   : > { %v316_v22 = vpop.xlane.xlu0 %315  ;;  %v320_v23 = vpop.xlane.xlu1 %319 }
  0x99   : > { %v380_v24 = vmul.f32 0.0078125, %v316_v22  ;;  %v382_v26 = vmul.f32 0.0078125, %v320_v23  ;;  %v2135_v22 = vld [vmem:[%s1975_s30 + $0xd0] sm:$0xff]  ;;  %v1789_v23 = vld [vmem:[%s2648_s3 + $0x24] ss:$8 sps:$4 sm:$0xff]  }
  0x9b   : > { %v2048_v25 = vsub.f32 %v283_v0, %v380_v24  ;;  %v2054_v32 = vsub.f32 %v285_v1, %v382_v26 }
  0x9c   : > { %v318_v27 = vpop.xlane.xlu0 %317  ;;  %v322_v28 = vpop.xlane.xlu1 %321 }
  0x9d   : > { %v381_v29 = vmul.f32 0.0078125, %v318_v27  ;;  %v444_v30 = vmul.f32 %v2048_v25, %v2048_v25  ;;  %v383_v33 = vmul.f32 0.0078125, %v322_v28  ;;  %v446_v38 = vmul.f32 %v2054_v32, %v2054_v32  ;;  %v1791_v27 = vld [vmem:[%s2648_s3 + $0x20] ss:$8 sps:$4 sm:$0xff]  }
  0x9f   : > { %v2052_v31 = vsub.f32 %v284_v2, %v381_v29  ;;  %476 = vadd.xlane.f32.xlu0 %v444_v30  ;;  %v2062_v37 = vsub.f32 %v286_v3, %v383_v33  ;;  %v2120_v2 = vld [vmem:[%s1975_s30 + $0xc8] sm:$0xff]  ;;  %v2150_v30 = vld [vmem:[%s1975_s30 + $0xd8] sm:$0xff] }
  0xa0   : > { %v324_v35 = vpop.xlane.xlu0 %323  ;;  %v326_v41 = vpop.xlane.xlu1 %325  ;;  %v1792_v33 = vld [vmem:[%s2648_s3 + $0x14] ss:$8 sps:$4 sm:$0xff]  }
  0xa1   : > { %v445_v36 = vmul.f32 %v2052_v31, %v2052_v31  ;;  %v384_v39 = vmul.f32 0.0078125, %v324_v35  ;;  %v447_v43 = vmul.f32 %v2062_v37, %v2062_v37  ;;  %v385_v44 = vmul.f32 0.0078125, %v326_v41  ;;  %v2165_v41 = vld [vmem:[%s1975_s30 + $0xe0] sm:$0xff] }
  0xa3   : > { %355 = vadd.xlane.f32.xlu0 %v2057_v34  ;;  %478 = vadd.xlane.f32.xlu1 %v445_v36  ;;  %v2070_v42 = vsub.f32 %v287_v4, %v384_v39  ;;  %v2085_v49 = vsub.f32 %v1983_v5, %v385_v44  ;;  %v1786_v4 = vld [vmem:[%s2648_s3 + $0x34] ss:$8 sps:$4 sm:$0xff]   ;;  %v1794_v36 = vld [vmem:[%s2648_s3 + $0x10] ss:$8 sps:$4 sm:$0xff]   ;;  %v1795_v44 = vld [vmem:[%s2648_s3 + $0x4] ss:$8 sps:$4 sm:$0xff]  }
  0xa4   : > { %v328_v46 = vpop.xlane.xlu0 %327  ;;  %v330_v53 = vpop.xlane.xlu1 %329  ;;  %878 = vmatprep.subr.bf16.mxu0 %v1786_v4  ;;  %v2202_v4 = vld [vmem:[%s1975_s30 + $0xf8] sm:$0xff] }
  0xa5   : > { %v448_v50 = vmul.f32 %v2070_v42, %v2070_v42  ;;  %v386_v51 = vmul.f32 0.0078125, %v328_v46  ;;  %v449_v57 = vmul.f32 %v2085_v49, %v2085_v49  ;;  %v387_v58 = vmul.f32 0.0078125, %v330_v53  ;;  %v1797_v46 = vld [vmem:[%s2648_s3] ss:$8 sps:$4 sm:$0xff]  }
  0xa7   : > { %480 = vadd.xlane.f32.xlu0 %v446_v38  ;;  %357 = vadd.xlane.f32.xlu1 %v2067_v40  ;;  %v2100_v56 = vsub.f32 %v1986_v6, %v386_v51  ;;  %v2115_v63 = vsub.f32 %v1989_v7, %v387_v58  ;;  %v1788_v6 = vld [vmem:[%s2648_s3 + $0x30] ss:$8 sps:$4 sm:$0xff]  }
  0xa8   : > { %v332_v60 = vpop.xlane.xlu0 %331  ;;  %v334_v3 = vpop.xlane.xlu1 %333  ;;  %879 = vmatpush1.bf16.msra.mxu0 %v1788_v6 }
  0xa9   : > { %v450_v0 = vmul.f32 %v2100_v56, %v2100_v56  ;;  %v388_v1 = vmul.f32 0.0078125, %v332_v60  ;;  %v451_v20 = vmul.f32 %v2115_v63, %v2115_v63  ;;  %v389_v21 = vmul.f32 0.0078125, %v334_v3  ;;  %880 = vmatprep.subr.bf16.mxu0 %v1789_v23  ;;  %v2190_v60 = vld [vmem:[%s1975_s30 + $0xf0] sm:$0xff] }
  0xab   : > { %359 = vadd.xlane.f32.xlu0 %v2075_v45  ;;  %482 = vadd.xlane.f32.xlu1 %v447_v43  ;;  %v2130_v7 = vsub.f32 %v1993_v8, %v388_v1  ;;  %v2145_v8 = vsub.f32 %v1996_v9, %v389_v21 }
  0xac   : > { %v336_v5 = vpop.xlane.xlu0 %335  ;;  %v338_v24 = vpop.xlane.xlu1 %337  ;;  %881 = vmatpush1.bf16.msra.mxu0 %v1791_v27 }
  0xad   : > { %v452_v28 = vmul.f32 %v2130_v7, %v2130_v7  ;;  %v390_v29 = vmul.f32 0.0078125, %v336_v5  ;;  %v453_v38 = vmul.f32 %v2145_v8, %v2145_v8  ;;  %v391_v39 = vmul.f32 0.0078125, %v338_v24  ;;  %882 = vmatprep.subr.bf16.mxu0 %v1792_v33 }
  0xaf   : > { %361 = vadd.xlane.f32.xlu1 %v2090_v52  ;;  %484 = vadd.xlane.f32.xlu0 %v448_v50  ;;  %v2160_v9 = vsub.f32 %v2003_v10, %v390_v29  ;;  %v2175_v10 = vsub.f32 %v2006_v11, %v391_v39  ;;  %v2180_v50 = vld [vmem:[%s1975_s30 + $0xe8] sm:$0xff] }
  0xb0   : > { %v340_v26 = vpop.xlane.xlu0 %339  ;;  %v342_v35 = vpop.xlane.xlu1 %341  ;;  %883 = vmatpush1.bf16.msra.mxu0 %v1794_v36 }
  0xb1   : > { %v454_v47 = vmul.f32 %v2160_v9, %v2160_v9  ;;  %v392_v48 = vmul.f32 0.0078125, %v340_v26  ;;  %884 = vmatprep.subr.bf16.mxu0 %v1795_v44  ;;  %v393_v53 = vmul.f32 0.0078125, %v342_v35 }
  0xb3   : > { %486 = vadd.xlane.f32.xlu1 %v449_v57  ;;  %363 = vadd.xlane.f32.xlu0 %v2105_v59  ;;  %v2185_v11 = vsub.f32 %v2011_v12, %v392_v48  ;;  %v455_v57 = vmul.f32 %v2175_v10, %v2175_v10  ;;  %v2193_v61 = vsub.f32 %v2014_v13, %v393_v53 }
  0xb4   : > { %v344_v43 = vpop.xlane.xlu0 %343  ;;  %v346_v51 = vpop.xlane.xlu1 %345  ;;  %885 = vmatpush1.bf16.msra.mxu0 %v1797_v46 }
  0xb5   : > { %v394_v58 = vmul.f32 0.0078125, %v344_v43  ;;  %v395_v62 = vmul.f32 0.0078125, %v346_v51  ;;  %v456_v12 = vmul.f32 %v2185_v11, %v2185_v11  ;;  %v457_v13 = vmul.f32 %v2193_v61, %v2193_v61 }
  0xb7   : > { %365 = vadd.xlane.f32.xlu1 %v2120_v2  ;;  %488 = vadd.xlane.f32.xlu0 %v450_v0  ;;  %v2197_v1 = vsub.f32 %v2019_v14, %v394_v58  ;;  %v2205_v6 = vsub.f32 %v2022_v15, %v395_v62 }
  0xb8   : > { %v348_v54 = vpop.xlane.xlu0 %347  ;;  %v350_v0 = vpop.xlane.xlu1 %349 }
  0xb9   : > { %v396_v3 = vmul.f32 0.0078125, %v348_v54  ;;  %v458_v14 = vmul.f32 %v2197_v1, %v2197_v1  ;;  %v397_v21 = vmul.f32 0.0078125, %v350_v0  ;;  %v459_v26 = vmul.f32 %v2205_v6, %v2205_v6 }
  0xbb   : > { %490 = vadd.xlane.f32.xlu1 %v451_v20  ;;  %367 = vadd.xlane.f32.xlu0 %v2135_v22  ;;  %v2211_v20 = vsub.f32 %v2027_v16, %v396_v3  ;;  %v2218_v15 = vsub.f32 %v2030_v17, %v397_v21 }
  0xbc   : > { %v352_v5 = vpop.xlane.xlu0 %351  ;;  %v354_v24 = vpop.xlane.xlu1 %353 }
  0xbd   : > { %v398_v23 = vmul.f32 0.0078125, %v352_v5  ;;  %v460_v16 = vmul.f32 %v2211_v20, %v2211_v20  ;;  %v461_v33 = vmul.f32 %v2218_v15, %v2218_v15 }
  0xbf   : > { %369 = vadd.xlane.f32.xlu1 %v2150_v30  ;;  %492 = vadd.xlane.f32.xlu0 %v452_v28  ;;  %v2221_v27 = vsub.f32 %v2035_v18, %v398_v23  ;;  %v399_v28 = vmul.f32 0.0078125, %v354_v24 }
  0xc1   : > { %v2226_v29 = vsub.f32 %v2038_v19, %v399_v28  ;;  %v462_v35 = vmul.f32 %v2221_v27, %v2221_v27 }
  0xc3   : > { %494 = vadd.xlane.f32.xlu1 %v453_v38  ;;  %371 = vadd.xlane.f32.xlu0 %v2165_v41  ;;  %v463_v17 = vmul.f32 %v2226_v29, %v2226_v29 }
  0xc7   : > { %373 = vadd.xlane.f32.xlu1 %v2180_v50  ;;  %496 = vadd.xlane.f32.xlu0 %v454_v47 }
  0xcb   : > { %498 = vadd.xlane.f32.xlu1 %v455_v57  ;;  %375 = vadd.xlane.f32.xlu0 %v2190_v60 }
  0xcf   : > { %377 = vadd.xlane.f32.xlu1 %v2202_v4  ;;  %500 = vadd.xlane.f32.xlu0 %v456_v12 }
  0xd3   : > { %502 = vadd.xlane.f32.xlu1 %v457_v13  ;;  %504 = vadd.xlane.f32.xlu0 %v458_v14 }
  0xd7   : > { %506 = vadd.xlane.f32.xlu1 %v459_v26  ;;  %508 = vadd.xlane.f32.xlu0 %v460_v16 }
  0xdb   : > { %510 = vadd.xlane.f32.xlu1 %v461_v33  ;;  %512 = vadd.xlane.f32.xlu0 %v462_v35 }
  0xdf   : > { %514 = vadd.xlane.f32.xlu1 %v463_v17 }
 0x128   : > { %v477_v18 = vpop.xlane.xlu0 %476 }
 0x129   : > { %v540_v36 = vmul.f32 0.0078125, %v477_v18 }
 0x12b   : > { %v572_v38 = vadd.f32 1e-06, %v540_v36 }
 0x12c   : > { %v479_v39 = vpop.xlane.xlu1 %478  ;;  %v356_v43 = vpop.xlane.xlu0 %355 }
 0x12d   : > { %1814 = vrsqrt.f32 %v572_v38  ;;  %v541_v19 = vmul.f32 0.0078125, %v479_v39  ;;  %v400_v44 = vmul.f32 0.0078125, %v356_v43  ;;  %v2258_v39 = vld [vmem:[%s2646_s1] ss:$0 sm:$0xff] }
 0x12f   : > { %v573_v46 = vadd.f32 1e-06, %v541_v19  ;;  %v2235_v47 = vsub.f32 %v2057_v34, %v400_v44 }
 0x130   : > { %v358_v48 = vpop.xlane.xlu1 %357  ;;  %v481_v51 = vpop.xlane.xlu0 %480 }
 0x131   : > { %1816 = vrsqrt.f32 %v573_v46  ;;  %v401_v53 = vmul.f32 0.0078125, %v358_v48  ;;  %v542_v54 = vmul.f32 0.0078125, %v481_v51  ;;  %v464_v57 = vmul.f32 %v2235_v47, %v2235_v47 }
 0x133   : > { %v2240_v58 = vsub.f32 %v2067_v40, %v401_v53  ;;  %v574_v62 = vadd.f32 1e-06, %v542_v54  ;;  %516 = vadd.xlane.f32.xlu0 %v464_v57  ;;  %v2270_v57 = vld [vmem:[%s2647_s2] ss:$0 sm:$0xff] }
 0x134   : > { %v483_v0 = vpop.xlane.xlu1 %482  ;;  %v360_v12 = vpop.xlane.xlu0 %359 }
 0x135   : > { %1818 = vrsqrt.f32 %v574_v62  ;;  %v543_v3 = vmul.f32 0.0078125, %v483_v0  ;;  %v402_v5 = vmul.f32 0.0078125, %v360_v12  ;;  %v465_v34 = vmul.f32 %v2240_v58, %v2240_v58 }
 0x137   : > { %v575_v13 = vadd.f32 1e-06, %v543_v3  ;;  %v2245_v14 = vsub.f32 %v2075_v45, %v402_v5  ;;  %518 = vadd.xlane.f32.xlu1 %v465_v34 }
 0x138   : > { %v362_v21 = vpop.xlane.xlu1 %361  ;;  %v485_v23 = vpop.xlane.xlu0 %484 }
 0x139   : > { %1820 = vrsqrt.f32 %v575_v13  ;;  %v403_v40 = vmul.f32 0.0078125, %v362_v21  ;;  %v544_v24 = vmul.f32 0.0078125, %v485_v23  ;;  %v466_v26 = vmul.f32 %v2245_v14, %v2245_v14 }
 0x13a   : > { %v1815_v16 = vpop.eup %1814 }
 0x13b   : > { %v2250_v28 = vsub.f32 %v2090_v52, %v403_v40  ;;  %v576_v33 = vadd.f32 1e-06, %v544_v24  ;;  %520 = vadd.xlane.f32.xlu0 %v466_v26  ;;  %v636_v45 = vmul.f32 %v1815_v16, %v2048_v25 }
 0x13c   : > { %v487_v35 = vpop.xlane.xlu1 %486  ;;  %v364_v17 = vpop.xlane.xlu0 %363 }
 0x13d   : > { %1822 = vrsqrt.f32 %v576_v33  ;;  %v545_v18 = vmul.f32 0.0078125, %v487_v35  ;;  %v404_v36 = vmul.f32 0.0078125, %v364_v17  ;;  %v467_v38 = vmul.f32 %v2250_v28, %v2250_v28 }
 0x13e   : > { %v1817_v43 = vpop.eup %1816  ;;  %v675_v48 = vmul.f32 %v2258_v39, %v636_v45 }
 0x13f   : > { %v577_v52 = vadd.f32 1e-06, %v545_v18  ;;  %v2261_v19 = vsub.f32 %v2105_v59, %v404_v36  ;;  %522 = vadd.xlane.f32.xlu1 %v467_v38  ;;  %v637_v44 = vmul.f32 %v1817_v43, %v2052_v31 }
 0x140   : > { %v366_v25 = vpop.xlane.xlu1 %365  ;;  %v489_v46 = vpop.xlane.xlu0 %488  ;;  %v714_v5 = vadd.f32 %v2270_v57, %v675_v48 }
 0x141   : > { %1824 = vrsqrt.f32 %v577_v52  ;;  %v405_v51 = vmul.f32 0.0078125, %v366_v25  ;;  %v546_v53 = vmul.f32 0.0078125, %v489_v46  ;;  %v468_v54 = vmul.f32 %v2261_v19, %v2261_v19 }
 0x142   : > { %v1819_v59 = vpop.eup %1818  ;;  %v676_v62 = vmul.f32 %v2258_v39, %v637_v44 }
 0x143   : > { %v2274_v31 = vsub.f32 %v2120_v2, %v405_v51  ;;  %v578_v0 = vadd.f32 1e-06, %v546_v53  ;;  %524 = vadd.xlane.f32.xlu0 %v468_v54  ;;  %v638_v13 = vmul.f32 %v1819_v59, %v2054_v32 }
 0x144   : > { %v491_v12 = vpop.xlane.xlu1 %490  ;;  %v368_v3 = vpop.xlane.xlu0 %367  ;;  %v715_v34 = vadd.f32 %v2270_v57, %v676_v62 }
 0x145   : > { %1826 = vrsqrt.f32 %v578_v0  ;;  %v547_v21 = vmul.f32 0.0078125, %v491_v12  ;;  %v406_v23 = vmul.f32 0.0078125, %v368_v3  ;;  %v469_v40 = vmul.f32 %v2274_v31, %v2274_v31 }
 0x146   : > { %v1821_v24 = vpop.eup %1820  ;;  %v746_v26 = vpack.c.bf16 %v715_v34, %v714_v5  ;;  %v677_v32 = vmul.f32 %v2258_v39, %v638_v13 }
 0x147   : > { %v579_v2 = vadd.f32 1e-06, %v547_v21  ;;  %v2282_v16 = vsub.f32 %v2135_v22, %v406_v23  ;;  %526 = vadd.xlane.f32.xlu1 %v469_v40  ;;  %v639_v33 = vmul.f32 %v1821_v24, %v2062_v37 }
 0x148   : > { %903 = vmatmul.mubr.bf16.vlgmr.msra.gmra.mxu0 %v746_v26  ;;  %v370_v35 = vpop.xlane.xlu1 %369  ;;  %v493_v17 = vpop.xlane.xlu0 %492  ;;  %v716_v25 = vadd.f32 %v2270_v57, %v677_v32 }
 0x149   : > { %1828 = vrsqrt.f32 %v579_v2  ;;  %v407_v45 = vmul.f32 0.0078125, %v370_v35  ;;  %v548_v18 = vmul.f32 0.0078125, %v493_v17  ;;  %v470_v36 = vmul.f32 %v2282_v16, %v2282_v16  ;;  %912 = vmatprep.mubr.bf16.mxu0 %v1918_v55 }
 0x14a   : > { %v1823_v38 = vpop.eup %1822  ;;  %v678_v22 = vmul.f32 %v2258_v39, %v639_v33 }
 0x14b   : > { %v2291_v43 = vsub.f32 %v2150_v30, %v407_v45  ;;  %v580_v37 = vadd.f32 1e-06, %v548_v18  ;;  %528 = vadd.xlane.f32.xlu0 %v470_v36  ;;  %v640_v48 = vmul.f32 %v1823_v38, %v2070_v42 }
 0x14c   : > { %v495_v52 = vpop.xlane.xlu1 %494  ;;  %v372_v44 = vpop.xlane.xlu0 %371  ;;  %v717_v46 = vadd.f32 %v2270_v57, %v678_v22 }
 0x14d   : > { %1830 = vrsqrt.f32 %v580_v37  ;;  %v549_v51 = vmul.f32 0.0078125, %v495_v52  ;;  %v408_v53 = vmul.f32 0.0078125, %v372_v44  ;;  %v471_v54 = vmul.f32 %v2291_v43, %v2291_v43 }
 0x14e   : > { %v1825_v59 = vpop.eup %1824  ;;  %v747_v62 = vpack.c.bf16 %v717_v46, %v716_v25  ;;  %v679_v42 = vmul.f32 %v2258_v39, %v640_v48 }
 0x14f   : > { %v581_v30 = vadd.f32 1e-06, %v549_v51  ;;  %v2299_v0 = vsub.f32 %v2165_v41, %v408_v53  ;;  %530 = vadd.xlane.f32.xlu1 %v471_v54  ;;  %v641_v12 = vmul.f32 %v1825_v59, %v2085_v49 }
 0x150   : > { %913 = vmatmul.mubr.bf16.gmra.mxu0 %v747_v62  ;;  %v374_v3 = vpop.xlane.xlu1 %373  ;;  %v497_v5 = vpop.xlane.xlu0 %496  ;;  %v718_v2 = vadd.f32 %v2270_v57, %v679_v42 }
 0x151   : > { %1832 = vrsqrt.f32 %v581_v30  ;;  %v409_v34 = vmul.f32 0.0078125, %v374_v3  ;;  %v550_v13 = vmul.f32 0.0078125, %v497_v5  ;;  %v472_v21 = vmul.f32 %v2299_v0, %v2299_v0  ;;  %922 = vmatprep.mubr.bf16.mxu0 %v1918_v55 }
 0x152   : > { %v1827_v23 = vpop.eup %1826  ;;  %v680_v41 = vmul.f32 %v2258_v39, %v641_v12 }
 0x153   : > { %v2308_v40 = vsub.f32 %v2180_v50, %v409_v34  ;;  %v582_v49 = vadd.f32 1e-06, %v550_v13  ;;  %532 = vadd.xlane.f32.xlu0 %v472_v21  ;;  %v642_v35 = vmul.f32 %v1827_v23, %v2100_v56 }
 0x154   : > { %v499_v24 = vpop.xlane.xlu1 %498  ;;  %v376_v26 = vpop.xlane.xlu0 %375  ;;  %v719_v33 = vadd.f32 %v2270_v57, %v680_v41 }
 0x155   : > { %1834 = vrsqrt.f32 %v582_v49  ;;  %v551_v17 = vmul.f32 0.0078125, %v499_v24  ;;  %v410_v32 = vmul.f32 0.0078125, %v376_v26  ;;  %v473_v45 = vmul.f32 %v2308_v40, %v2308_v40 }
 0x156   : > { %v1829_v18 = vpop.eup %1828  ;;  %v748_v36 = vpack.c.bf16 %v719_v33, %v718_v2  ;;  %v681_v56 = vmul.f32 %v2258_v39, %v642_v35 }
 0x157   : > { %v583_v50 = vadd.f32 1e-06, %v551_v17  ;;  %v2316_v38 = vsub.f32 %v2190_v60, %v410_v32  ;;  %534 = vadd.xlane.f32.xlu1 %v473_v45  ;;  %v643_v22 = vmul.f32 %v1829_v18, %v2115_v63 }
 0x158   : > { %923 = vmatmul.mubr.bf16.gmra.mxu0 %v748_v36  ;;  %v378_v37 = vpop.xlane.xlu1 %377  ;;  %v501_v52 = vpop.xlane.xlu0 %500  ;;  %v720_v62 = vadd.f32 %v2270_v57, %v681_v56 }
 0x159   : > { %1836 = vrsqrt.f32 %v583_v50  ;;  %v411_v44 = vmul.f32 0.0078125, %v378_v37  ;;  %v552_v25 = vmul.f32 0.0078125, %v501_v52  ;;  %v474_v46 = vmul.f32 %v2316_v38, %v2316_v38  ;;  %932 = vmatprep.mubr.bf16.mxu0 %v1918_v55 }
 0x15a   : > { %v1831_v48 = vpop.eup %1830  ;;  %v682_v60 = vmul.f32 %v2258_v39, %v643_v22 }
 0x15b   : > { %v2325_v51 = vsub.f32 %v2202_v4, %v411_v44  ;;  %v584_v63 = vadd.f32 1e-06, %v552_v25  ;;  %536 = vadd.xlane.f32.xlu0 %v474_v46  ;;  %v644_v53 = vmul.f32 %v1831_v48, %v2130_v7 }
 0x15c   : > { %v503_v54 = vpop.xlane.xlu1 %502  ;;  %v505_v59 = vpop.xlane.xlu0 %504  ;;  %v721_v30 = vadd.f32 %v2270_v57, %v682_v60 }
 0x15d   : > { %1838 = vrsqrt.f32 %v584_v63  ;;  %v553_v12 = vmul.f32 0.0078125, %v503_v54  ;;  %v554_v3 = vmul.f32 0.0078125, %v505_v59  ;;  %v475_v5 = vmul.f32 %v2325_v51, %v2325_v51 }
 0x15e   : > { %v1833_v42 = vpop.eup %1832  ;;  %v749_v34 = vpack.c.bf16 %v721_v30, %v720_v62  ;;  %v683_v7 = vmul.f32 %v2258_v39, %v644_v53 }
 0x15f   : > { %v585_v4 = vadd.f32 1e-06, %v553_v12  ;;  %538 = vadd.xlane.f32.xlu1 %v475_v5  ;;  %v645_v13 = vmul.f32 %v1833_v42, %v2145_v8  ;;  %v586_v21 = vadd.f32 1e-06, %v554_v3 }
 0x160   : > { %933 = vmatmul.mubr.bf16.gmra.mxu0 %v749_v34  ;;  %v507_v23 = vpop.xlane.xlu1 %506  ;;  %v509_v49 = vpop.xlane.xlu0 %508  ;;  %v722_v33 = vadd.f32 %v2270_v57, %v683_v7  ;;  %v1800_v7 = vld [vmem:[%s2650_s5 + $0x70] sm:$0xff]  }
 0x161   : > { %1840 = vrsqrt.f32 %v585_v4  ;;  %v555_v41 = vmul.f32 0.0078125, %v507_v23  ;;  %942 = vmatprep.mubr.bf16.mxu0 %v1918_v55  ;;  %v684_v24 = vmul.f32 %v2258_v39, %v645_v13  ;;  %v556_v17 = vmul.f32 0.0078125, %v509_v49  ;;  %v1799_v13 = vld [vmem:[%s2650_s5 + $0x38] sm:$0xff]  }
 0x162   : > { %v1835_v26 = vpop.eup %1834  ;;  %1842 = vrsqrt.f32 %v586_v21 }
 0x163   : > { %v587_v2 = vadd.f32 1e-06, %v555_v41  ;;  %v723_v35 = vadd.f32 %v2270_v57, %v684_v24  ;;  %v646_v8 = vmul.f32 %v1835_v26, %v2160_v9  ;;  %v588_v52 = vadd.f32 1e-06, %v556_v17 }
 0x164   : > { %v511_v32 = vpop.xlane.xlu1 %510  ;;  %v513_v44 = vpop.xlane.xlu0 %512 }
 0x165   : > { %1844 = vrsqrt.f32 %v587_v2  ;;  %v557_v45 = vmul.f32 0.0078125, %v511_v32  ;;  %v750_v18 = vpack.c.bf16 %v723_v35, %v722_v33  ;;  %v685_v37 = vmul.f32 %v2258_v39, %v646_v8  ;;  %v1802_v33 = vld [vmem:[%s2650_s5 + $0x68] sm:$0xff]   ;;  %v1804_v8 = vld [vmem:[%s2650_s5 + $0x60] sm:$0xff]  }
 0x166   : > { %v1837_v36 = vpop.eup %1836  ;;  %v1803_v35 = vld [vmem:[%s2650_s5 + $0x28] sm:$0xff]  }
 0x167   : > { %v589_v50 = vadd.f32 1e-06, %v557_v45  ;;  %v647_v22 = vmul.f32 %v1837_v36, %v2175_v10  ;;  %v724_v48 = vadd.f32 %v2270_v57, %v685_v37  ;;  %v558_v10 = vmul.f32 0.0078125, %v513_v44 }
 0x168   : > { %943 = vmatmul.mubr.bf16.gmra.mxu0 %v750_v18  ;;  %v515_v56 = vpop.xlane.xlu1 %514  ;;  %v1805_v18 = vld [vmem:[%s2650_s5 + $0x20] sm:$0xff]  }
 0x169   : > { %952 = vmatprep.mubr.bf16.mxu0 %v1918_v55  ;;  %v686_v9 = vmul.f32 %v2258_v39, %v647_v22  ;;  %1846 = vrsqrt.f32 %v589_v50  ;;  %v559_v46 = vmul.f32 0.0078125, %v515_v56  ;;  %v590_v12 = vadd.f32 1e-06, %v558_v10  ;;  %v1807_v56 = vld [vmem:[%s2650_s5 + $0x18] sm:$0xff]   ;;  %v1810_v10 = vld [vmem:[%s2650_s5 + $0x48] sm:$0xff]  }
 0x16a   : > { %v1839_v25 = vpop.eup %1838  ;;  %1848 = vrsqrt.f32 %v588_v52  ;;  %v1806_v52 = vld [vmem:[%s2650_s5 + $0x58] sm:$0xff]  }
 0x16b   : > { %v725_v60 = vadd.f32 %v2270_v57, %v686_v9  ;;  %v648_v63 = vmul.f32 %v1839_v25, %v2185_v11  ;;  %v591_v59 = vadd.f32 1e-06, %v559_v46 }
 0x16d   : > { %v751_v53 = vpack.c.bf16 %v725_v60, %v724_v48  ;;  %v687_v30 = vmul.f32 %v2258_v39, %v648_v63  ;;  %1850 = vrsqrt.f32 %v591_v59  ;;  %v1808_v48 = vld [vmem:[%s2650_s5 + $0x50] sm:$0xff]   ;;  %v1812_v59 = vld [vmem:[%s2650_s5 + $0x40] sm:$0xff]  }
 0x16e   : > { %v1841_v54 = vpop.eup %1840  ;;  %1852 = vrsqrt.f32 %v590_v12  ;;  %v1809_v60 = vld [vmem:[%s2650_s5 + $0x10] sm:$0xff]  }
 0x16f   : > { %v649_v62 = vmul.f32 %v1841_v54, %v2193_v61  ;;  %v1843_v3 = vpop.eup %1842  ;;  %v726_v11 = vadd.f32 %v2270_v57, %v687_v30  ;;  %v1798_v61 = vld [vmem:[%s2650_s5 + $0x78] sm:$0xff]  }
 0x170   : > { %953 = vmatmul.mubr.bf16.gmra.mxu0 %v751_v53  ;;  %v650_v21 = vmul.f32 %v1843_v3, %v2197_v1  ;;  %1653 = vmatprep.subr.bf16.mxu1 %v1798_v61  ;;  %v1811_v53 = vld [vmem:[%s2650_s5 + $0x8] sm:$0xff]  }
 0x171   : > { %962 = vmatprep.mubr.bf16.mxu0 %v1918_v55  ;;  %v688_v5 = vmul.f32 %v2258_v39, %v649_v62  ;;  %1654 = vmatpush3.bf16.msra.mxu1 %v1799_v13  ;;  %v1813_v62 = vld [vmem:[%s2650_s5] sm:$0xff]  }
 0x172   : > { %v1845_v42 = vpop.eup %1844  ;;  %1655 = vmatprep.subr.bf16.mxu1 %v1800_v7  ;;  %v689_v24 = vmul.f32 %v2258_v39, %v650_v21 }
 0x173   : > { %v727_v34 = vadd.f32 %v2270_v57, %v688_v5  ;;  %v651_v4 = vmul.f32 %v1845_v42, %v2205_v6  ;;  %v1801_v6 = vld [vmem:[%s2650_s5 + $0x30] sm:$0xff]  }
 0x174   : > { %v728_v17 = vadd.f32 %v2270_v57, %v689_v24 }
 0x175   : > { %v752_v23 = vpack.c.bf16 %v727_v34, %v726_v11  ;;  %v690_v41 = vmul.f32 %v2258_v39, %v651_v4  ;;  %1656 = vmatpush3.bf16.msra.mxu1 %v1801_v6 }
 0x176   : > { %v1847_v49 = vpop.eup %1846  ;;  %1657 = vmatprep.subr.bf16.mxu1 %v1802_v33 }
 0x177   : > { %v1849_v26 = vpop.eup %1848  ;;  %v729_v2 = vadd.f32 %v2270_v57, %v690_v41  ;;  %v653_v1 = vmul.f32 %v1847_v49, %v2218_v15 }
 0x178   : > { %963 = vmatmul.mubr.bf16.gmra.mxu0 %v752_v23  ;;  %v652_v32 = vmul.f32 %v1849_v26, %v2211_v20 }
 0x179   : > { %972 = vmatprep.mubr.bf16.mxu0 %v1918_v55  ;;  %v753_v45 = vpack.c.bf16 %v729_v2, %v728_v17  ;;  %v692_v15 = vmul.f32 %v2258_v39, %v653_v1  ;;  %1658 = vmatpush3.bf16.msra.mxu1 %v1803_v35 }
 0x17a   : > { %v1851_v36 = vpop.eup %1850  ;;  %1659 = vmatprep.subr.bf16.mxu1 %v1804_v8  ;;  %v691_v50 = vmul.f32 %v2258_v39, %v652_v32 }
 0x17b   : > { %v1853_v22 = vpop.eup %1852  ;;  %v731_v37 = vadd.f32 %v2270_v57, %v692_v15  ;;  %v655_v20 = vmul.f32 %v1851_v36, %v2226_v29 }
 0x17c   : > { %v730_v44 = vadd.f32 %v2270_v57, %v691_v50  ;;  %v654_v9 = vmul.f32 %v1853_v22, %v2221_v27 }
 0x17d   : > { %1660 = vmatpush3.bf16.msra.mxu1 %v1805_v18  ;;  %v694_v46 = vmul.f32 %v2258_v39, %v655_v20 }
 0x17e   : > { %1661 = vmatprep.subr.bf16.mxu1 %v1806_v52  ;;  %v754_v25 = vpack.c.bf16 %v731_v37, %v730_v44  ;;  %v693_v29 = vmul.f32 %v2258_v39, %v654_v9 }
 0x17f   : > { %v733_v27 = vadd.f32 %v2270_v57, %v694_v46 }
 0x180   : > { %973 = vmatmul.mubr.bf16.gmra.mxu0 %v753_v45  ;;  %v732_v63 = vadd.f32 %v2270_v57, %v693_v29 }
 0x181   : > { %982 = vmatprep.mubr.bf16.mxu0 %v1918_v55  ;;  %1662 = vmatpush3.bf16.msra.mxu1 %v1807_v56 }
 0x182   : > { %1663 = vmatprep.subr.bf16.mxu1 %v1808_v48  ;;  %v755_v54 = vpack.c.bf16 %v733_v27, %v732_v63 }
 0x185   : > { %1664 = vmatpush3.bf16.msra.mxu1 %v1809_v60 }
 0x186   : > { %1665 = vmatprep.subr.bf16.mxu1 %v1810_v10 }
 0x188   : > { %983 = vmatmul.mubr.bf16.gmra.mxu0 %v754_v25 }
 0x189   : > { %992 = vmatprep.mubr.bf16.mxu0 %v1918_v55  ;;  %1666 = vmatpush3.bf16.msra.mxu1 %v1811_v53 }
 0x18a   : > { %1667 = vmatprep.subr.bf16.mxu1 %v1812_v59 }
 0x18d   : > { %1668 = vmatpush3.bf16.msra.mxu1 %v1813_v62 }
 0x190   : > { %993 = vmatmul.mubr.bf16.gmra.mxu0 %v755_v54 }
 0x191   : > { %1002 = vmatprep.mubr.bf16.mxu0 %v1918_v55 }
 0x1bc   : > { %v517_v30 = vpop.xlane.xlu0 %516 }
 0x1bd   : > { %v560_v12 = vmul.f32 0.0078125, %v517_v30 }
 0x1bf   : > { %v592_v3 = vadd.f32 1e-06, %v560_v12 }
 0x1c0   : > { %v519_v5 = vpop.xlane.xlu1 %518 }
 0x1c1   : > { %1854 = vrsqrt.f32 %v592_v3  ;;  %v561_v42 = vmul.f32 0.0078125, %v519_v5 }
 0x1c3   : > { %v593_v11 = vadd.f32 1e-06, %v561_v42 }
 0x1c4   : > { %v521_v34 = vpop.xlane.xlu0 %520 }
 0x1c5   : > { %1856 = vrsqrt.f32 %v593_v11  ;;  %v562_v4 = vmul.f32 0.0078125, %v521_v34 }
 0x1c7   : > { %v594_v61 = vadd.f32 1e-06, %v562_v4 }
 0x1c8   : > { %v523_v13 = vpop.xlane.xlu1 %522 }
 0x1c9   : > { %1858 = vrsqrt.f32 %v594_v61  ;;  %v563_v7 = vmul.f32 0.0078125, %v523_v13 }
 0x1cb   : > { %v595_v21 = vadd.f32 1e-06, %v563_v7 }
 0x1cc   : > { %v525_v23 = vpop.xlane.xlu0 %524 }
 0x1cd   : > { %1860 = vrsqrt.f32 %v595_v21  ;;  %v564_v41 = vmul.f32 0.0078125, %v525_v23 }
 0x1ce   : > { %v1855_v6 = vpop.eup %1854 }
 0x1cf   : > { %v596_v49 = vadd.f32 1e-06, %v564_v41  ;;  %v656_v24 = vmul.f32 %v1855_v6, %v2235_v47 }
 0x1d0   : > { %v527_v26 = vpop.xlane.xlu1 %526 }
 0x1d1   : > { %1862 = vrsqrt.f32 %v596_v49  ;;  %v565_v2 = vmul.f32 0.0078125, %v527_v26  ;;  %v695_v8 = vmul.f32 %v2258_v39, %v656_v24 }
 0x1d2   : > { %v1857_v1 = vpop.eup %1856 }
 0x1d3   : > { %v597_v33 = vadd.f32 1e-06, %v565_v2  ;;  %v657_v35 = vmul.f32 %v1857_v1, %v2240_v58  ;;  %v734_v36 = vadd.f32 %v2270_v57, %v695_v8 }
 0x1d4   : > { %v529_v17 = vpop.xlane.xlu0 %528 }
 0x1d5   : > { %1864 = vrsqrt.f32 %v597_v33  ;;  %v566_v32 = vmul.f32 0.0078125, %v529_v17  ;;  %v696_v45 = vmul.f32 %v2258_v39, %v657_v35 }
 0x1d6   : > { %v1859_v15 = vpop.eup %1858 }
 0x1d7   : > { %v598_v18 = vadd.f32 1e-06, %v566_v32  ;;  %v735_v47 = vadd.f32 %v2270_v57, %v696_v45  ;;  %v658_v50 = vmul.f32 %v1859_v15, %v2245_v14 }
 0x1d8   : > { %v531_v22 = vpop.xlane.xlu1 %530 }
 0x1d9   : > { %1866 = vrsqrt.f32 %v598_v18  ;;  %v567_v37 = vmul.f32 0.0078125, %v531_v22  ;;  %v756_v20 = vpack.c.bf16 %v735_v47, %v734_v36  ;;  %v697_v44 = vmul.f32 %v2258_v39, %v658_v50 }
 0x1da   : > { %v1861_v58 = vpop.eup %1860  ;;  %v780_v36 = vlaneseq }
 0x1db   : > { %v599_v52 = vadd.f32 1e-06, %v567_v37  ;;  %1003 = vmatmul.mubr.bf16.gmra.mxu0 %v756_v20  ;;  %v659_v56 = vmul.f32 %v1861_v58, %v2250_v28  ;;  %v736_v48 = vadd.f32 %v2270_v57, %v697_v44 }
 0x1dc   : > { %v533_v9 = vpop.xlane.xlu0 %532  ;;  %1012 = vmatprep.mubr.bf16.mxu0 %v1918_v55  ;;  %v781_v37 = vshrl.u32 %v780_v36, 7 }
 0x1dd   : > { %1868 = vrsqrt.f32 %v599_v52  ;;  %v568_v25 = vmul.f32 0.0078125, %v533_v9  ;;  %v698_v46 = vmul.f32 %v2258_v39, %v659_v56 }
 0x1de   : > { %v1863_v29 = vpop.eup %1862  ;;  %v782_v20 = vsub.s32 0, %v781_v37 }
 0x1df   : > { %v600_v14 = vadd.f32 1e-06, %v568_v25  ;;  %v737_v60 = vadd.f32 %v2270_v57, %v698_v46  ;;  %v660_v27 = vmul.f32 %v1863_v29, %v2261_v19 }
 0x1e0   : > { %v535_v63 = vpop.xlane.xlu1 %534 }
 0x1e1   : > { %1870 = vrsqrt.f32 %v600_v14  ;;  %v569_v28 = vmul.f32 0.0078125, %v535_v63  ;;  %v757_v10 = vpack.c.bf16 %v737_v60, %v736_v48  ;;  %v699_v62 = vmul.f32 %v2258_v39, %v660_v27 }
 0x1e2   : > { %v1865_v53 = vpop.eup %1864 }
 0x1e3   : > { %v601_v54 = vadd.f32 1e-06, %v569_v28  ;;  %1013 = vmatmul.mubr.bf16.gmra.mxu0 %v757_v10  ;;  %v661_v59 = vmul.f32 %v1865_v53, %v2274_v31  ;;  %v738_v42 = vadd.f32 %v2270_v57, %v699_v62 }
 0x1e4   : > { %v537_v30 = vpop.xlane.xlu0 %536  ;;  %1022 = vmatprep.mubr.bf16.mxu0 %v1918_v55 }
 0x1e5   : > { %1872 = vrsqrt.f32 %v601_v54  ;;  %v570_v12 = vmul.f32 0.0078125, %v537_v30  ;;  %v700_v3 = vmul.f32 %v2258_v39, %v661_v59 }
 0x1e6   : > { %v1867_v5 = vpop.eup %1866 }
 0x1e7   : > { %v602_v19 = vadd.f32 1e-06, %v570_v12  ;;  %v739_v11 = vadd.f32 %v2270_v57, %v700_v3  ;;  %v662_v34 = vmul.f32 %v1867_v5, %v2282_v16 }
 0x1e8   : > { %v539_v4 = vpop.xlane.xlu1 %538 }
 0x1e9   : > { %1874 = vrsqrt.f32 %v602_v19  ;;  %v571_v31 = vmul.f32 0.0078125, %v539_v4  ;;  %v758_v61 = vpack.c.bf16 %v739_v11, %v738_v42  ;;  %v701_v23 = vmul.f32 %v2258_v39, %v662_v34 }
 0x1ea   : > { %v1869_v13 = vpop.eup %1868 }
 0x1eb   : > { %v603_v7 = vadd.f32 1e-06, %v571_v31  ;;  %1023 = vmatmul.mubr.bf16.gmra.mxu0 %v758_v61  ;;  %v663_v21 = vmul.f32 %v1869_v13, %v2291_v43  ;;  %v740_v49 = vadd.f32 %v2270_v57, %v701_v23 }
 0x1ec   : > { %1032 = vmatprep.mubr.bf16.mxu0 %v1918_v55 }
 0x1ed   : > { %1876 = vrsqrt.f32 %v603_v7  ;;  %v702_v41 = vmul.f32 %v2258_v39, %v663_v21 }
 0x1ee   : > { %v1871_v6 = vpop.eup %1870 }
 0x1ef   : > { %v741_v16 = vadd.f32 %v2270_v57, %v702_v41  ;;  %v664_v24 = vmul.f32 %v1871_v6, %v2299_v0 }
 0x1f1   : > { %v759_v26 = vpack.c.bf16 %v741_v16, %v740_v49  ;;  %v703_v43 = vmul.f32 %v2258_v39, %v664_v24 }
 0x1f2   : > { %v1873_v2 = vpop.eup %1872 }
 0x1f3   : > { %1033 = vmatmul.mubr.bf16.gmra.mxu0 %v759_v26  ;;  %v665_v1 = vmul.f32 %v1873_v2, %v2308_v40  ;;  %v742_v8 = vadd.f32 %v2270_v57, %v703_v43 }
 0x1f4   : > { %1042 = vmatprep.mubr.bf16.mxu0 %v1918_v55 }
 0x1f5   : > { %v704_v33 = vmul.f32 %v2258_v39, %v665_v1 }
 0x1f6   : > { %v1875_v35 = vpop.eup %1874 }
 0x1f7   : > { %v743_v17 = vadd.f32 %v2270_v57, %v704_v33  ;;  %v666_v32 = vmul.f32 %v1875_v35, %v2316_v38  ;;  %v786_v38 = vsub.s32 1, %v781_v37 }
 0x1f9   : > { %v760_v45 = vpack.c.bf16 %v743_v17, %v742_v8  ;;  %v705_v40 = vmul.f32 %v2258_v39, %v666_v32 }
 0x1fa   : > { %v1877_v0 = vpop.eup %1876 }
 0x1fb   : > { %1043 = vmatmul.mubr.bf16.gmra.mxu0 %v760_v45  ;;  %v667_v15 = vmul.f32 %v1877_v0, %v2325_v51  ;;  %v744_v47 = vadd.f32 %v2270_v57, %v705_v40  ;;  %v778_v51 = vld [vmem:[%s2649_s4] sm:$0x3] }
 0x1fc   : > { %1052 = vmatprep.mubr.bf16.mxu0 %v1918_v55  ;;  %v2466_v52 = vrot.slane %v778_v51, %v786_v38  ;;  %v2468_v55 = vrot.slane %v778_v51, %v782_v20 }
 0x1fd   : > { %v706_v18 = vmul.f32 %v2258_v39, %v667_v15 }
 0x1ff   : > { %v745_v50 = vadd.f32 %v2270_v57, %v706_v18 }
 0x201   : > { %v761_v22 = vpack.c.bf16 %v745_v50, %v744_v47 }
 0x203   : > { %1053 = vmatmul.mubr.bf16.gmra.mxu0 %v761_v22 }
 0x208   : > { %v904_v58 = vpop.f32.mrf.mxu0 }
 0x209   : > { %v905_v9 = vadd.f32 %v904_v58, %v2468_v55 }
 0x20a   : > { %v906_v39 = vpop.f32.mrf.mxu0 }
 0x20b   : > { %v907_v44 = vadd.f32 %v906_v39, %v2466_v52  ;;  %v1063_v27 = vmax.f32 %v905_v9, 0.0 }
 0x20c   : > { %v908_v56 = vpop.f32.mrf.mxu0 }
 0x20d   : > { %v909_v57 = vadd.f32 %v908_v56, %v2468_v55  ;;  %v1064_v48 = vmax.f32 %v907_v44, 0.0 }
 0x20e   : > { %v910_v25 = vpop.f32.mrf.mxu0 }
 0x20f   : > { %v911_v46 = vadd.f32 %v910_v25, %v2466_v52  ;;  %v1065_v29 = vmax.f32 %v909_v57, 0.0 }
 0x210   : > { %v914_v14 = vpop.f32.mrf.mxu0 }
 0x211   : > { %v1066_v60 = vmax.f32 %v911_v46, 0.0  ;;  %v1127_v10 = vpack.c.bf16 %v1065_v29, %v1063_v27  ;;  %v915_v62 = vadd.f32 %v914_v14, %v2468_v55 }
 0x212   : > { %v916_v63 = vpop.f32.mrf.mxu0 }
 0x213   : > { %v1128_v28 = vpack.c.bf16 %v1066_v60, %v1064_v48  ;;  %v917_v54 = vadd.f32 %v916_v63, %v2466_v52  ;;  %v1067_v11 = vmax.f32 %v915_v62, 0.0 }
 0x214   : > { %v918_v53 = vpop.f32.mrf.mxu0 }
 0x215   : > { %v919_v59 = vadd.f32 %v918_v53, %v2468_v55  ;;  %1326 = vmatprep.mubr.bf16.mxu1 %v1128_v28  ;;  %v1068_v19 = vmax.f32 %v917_v54, 0.0 }
 0x216   : > { %v920_v30 = vpop.f32.mrf.mxu0  ;;  %1327 = vmatmul.mubr.bf16.vlgmr.msra.gmra.mxu1 %v1127_v10 }
 0x217   : > { %v921_v12 = vadd.f32 %v920_v30, %v2466_v52  ;;  %v1069_v3 = vmax.f32 %v919_v59, 0.0 }
 0x218   : > { %v924_v5 = vpop.f32.mrf.mxu0 }
 0x219   : > { %v1070_v42 = vmax.f32 %v921_v12, 0.0  ;;  %v1129_v31 = vpack.c.bf16 %v1069_v3, %v1067_v11  ;;  %v925_v21 = vadd.f32 %v924_v5, %v2468_v55 }
 0x21a   : > { %v926_v34 = vpop.f32.mrf.mxu0 }
 0x21b   : > { %v1130_v4 = vpack.c.bf16 %v1070_v42, %v1068_v19  ;;  %v927_v13 = vadd.f32 %v926_v34, %v2466_v52  ;;  %v1071_v26 = vmax.f32 %v925_v21, 0.0 }
 0x21c   : > { %v928_v61 = vpop.f32.mrf.mxu0 }
 0x21d   : > { %v929_v7 = vadd.f32 %v928_v61, %v2468_v55  ;;  %1334 = vmatprep.mubr.bf16.mxu1 %v1130_v4  ;;  %v1072_v16 = vmax.f32 %v927_v13, 0.0 }
 0x21e   : > { %v930_v23 = vpop.f32.mrf.mxu0  ;;  %1335 = vmatmul.mubr.bf16.gmra.mxu1 %v1129_v31 }
 0x21f   : > { %v931_v41 = vadd.f32 %v930_v23, %v2466_v52  ;;  %v1073_v6 = vmax.f32 %v929_v7, 0.0 }
 0x220   : > { %v934_v49 = vpop.f32.mrf.mxu0 }
 0x221   : > { %v1074_v24 = vmax.f32 %v931_v41, 0.0  ;;  %v1131_v43 = vpack.c.bf16 %v1073_v6, %v1071_v26  ;;  %v935_v17 = vadd.f32 %v934_v49, %v2468_v55 }
 0x222   : > { %v936_v2 = vpop.f32.mrf.mxu0 }
 0x223   : > { %v1132_v1 = vpack.c.bf16 %v1074_v24, %v1072_v16  ;;  %v937_v35 = vadd.f32 %v936_v2, %v2466_v52  ;;  %v1075_v36 = vmax.f32 %v935_v17, 0.0 }
 0x224   : > { %v938_v33 = vpop.f32.mrf.mxu0 }
 0x225   : > { %v939_v8 = vadd.f32 %v938_v33, %v2468_v55  ;;  %1342 = vmatprep.mubr.bf16.mxu1 %v1132_v1  ;;  %v1076_v40 = vmax.f32 %v937_v35, 0.0 }
 0x226   : > { %v940_v32 = vpop.f32.mrf.mxu0  ;;  %1343 = vmatmul.mubr.bf16.gmra.mxu1 %v1131_v43 }
 0x227   : > { %v941_v45 = vadd.f32 %v940_v32, %v2466_v52  ;;  %v1077_v0 = vmax.f32 %v939_v8, 0.0 }
 0x228   : > { %v944_v15 = vpop.f32.mrf.mxu0 }
 0x229   : > { %v1078_v18 = vmax.f32 %v941_v45, 0.0  ;;  %v1133_v22 = vpack.c.bf16 %v1077_v0, %v1075_v36  ;;  %v945_v51 = vadd.f32 %v944_v15, %v2468_v55 }
 0x22a   : > { %v946_v47 = vpop.f32.mrf.mxu0 }
 0x22b   : > { %v1134_v50 = vpack.c.bf16 %v1078_v18, %v1076_v40  ;;  %v947_v38 = vadd.f32 %v946_v47, %v2466_v52  ;;  %v1079_v25 = vmax.f32 %v945_v51, 0.0 }
 0x22c   : > { %v948_v37 = vpop.f32.mrf.mxu0 }
 0x22d   : > { %v949_v20 = vadd.f32 %v948_v37, %v2468_v55  ;;  %1350 = vmatprep.mubr.bf16.mxu1 %v1134_v50  ;;  %v1080_v57 = vmax.f32 %v947_v38, 0.0 }
 0x22e   : > { %v950_v58 = vpop.f32.mrf.mxu0  ;;  %1351 = vmatmul.mubr.bf16.gmra.mxu1 %v1133_v22 }
 0x22f   : > { %v951_v39 = vadd.f32 %v950_v58, %v2466_v52  ;;  %v1081_v56 = vmax.f32 %v949_v20, 0.0 }
 0x230   : > { %v954_v44 = vpop.f32.mrf.mxu0 }
 0x231   : > { %v1082_v9 = vmax.f32 %v951_v39, 0.0  ;;  %v1135_v14 = vpack.c.bf16 %v1081_v56, %v1079_v25  ;;  %v955_v63 = vadd.f32 %v954_v44, %v2468_v55 }
 0x232   : > { %v956_v46 = vpop.f32.mrf.mxu0 }
 0x233   : > { %v1136_v29 = vpack.c.bf16 %v1082_v9, %v1080_v57  ;;  %v957_v60 = vadd.f32 %v956_v46, %v2466_v52  ;;  %v1083_v30 = vmax.f32 %v955_v63, 0.0 }
 0x234   : > { %v958_v48 = vpop.f32.mrf.mxu0 }
 0x235   : > { %v959_v27 = vadd.f32 %v958_v48, %v2468_v55  ;;  %1358 = vmatprep.mubr.bf16.mxu1 %v1136_v29  ;;  %v1084_v59 = vmax.f32 %v957_v60, 0.0 }
 0x236   : > { %v960_v28 = vpop.f32.mrf.mxu0  ;;  %1359 = vmatmul.mubr.bf16.gmra.mxu1 %v1135_v14 }
 0x237   : > { %v961_v10 = vadd.f32 %v960_v28, %v2466_v52  ;;  %v1085_v53 = vmax.f32 %v959_v27, 0.0 }
 0x238   : > { %v964_v54 = vpop.f32.mrf.mxu0 }
 0x239   : > { %v1086_v62 = vmax.f32 %v961_v10, 0.0  ;;  %v1137_v5 = vpack.c.bf16 %v1085_v53, %v1083_v30  ;;  %v965_v34 = vadd.f32 %v964_v54, %v2468_v55 }
 0x23a   : > { %v966_v12 = vpop.f32.mrf.mxu0 }
 0x23b   : > { %v1138_v3 = vpack.c.bf16 %v1086_v62, %v1084_v59  ;;  %v967_v42 = vadd.f32 %v966_v12, %v2466_v52  ;;  %v1087_v23 = vmax.f32 %v965_v34, 0.0 }
 0x23c   : > { %v968_v19 = vpop.f32.mrf.mxu0 }
 0x23d   : > { %v969_v11 = vadd.f32 %v968_v19, %v2468_v55  ;;  %1366 = vmatprep.mubr.bf16.mxu1 %v1138_v3  ;;  %v1088_v7 = vmax.f32 %v967_v42, 0.0 }
 0x23e   : > { %v970_v4 = vpop.f32.mrf.mxu0  ;;  %1367 = vmatmul.mubr.bf16.gmra.mxu1 %v1137_v5 }
 0x23f   : > { %v971_v31 = vadd.f32 %v970_v4, %v2466_v52  ;;  %v1089_v61 = vmax.f32 %v969_v11, 0.0 }
 0x240   : > { %v974_v13 = vpop.f32.mrf.mxu0 }
 0x241   : > { %v1090_v21 = vmax.f32 %v971_v31, 0.0  ;;  %v1139_v49 = vpack.c.bf16 %v1089_v61, %v1087_v23  ;;  %v975_v2 = vadd.f32 %v974_v13, %v2468_v55 }
 0x242   : > { %v976_v41 = vpop.f32.mrf.mxu0 }
 0x243   : > { %v1140_v6 = vpack.c.bf16 %v1090_v21, %v1088_v7  ;;  %v977_v24 = vadd.f32 %v976_v41, %v2466_v52  ;;  %v1091_v32 = vmax.f32 %v975_v2, 0.0 }
 0x244   : > { %v978_v16 = vpop.f32.mrf.mxu0 }
 0x245   : > { %v979_v26 = vadd.f32 %v978_v16, %v2468_v55  ;;  %1374 = vmatprep.mubr.bf16.mxu1 %v1140_v6  ;;  %v1092_v8 = vmax.f32 %v977_v24, 0.0 }
 0x246   : > { %v980_v1 = vpop.f32.mrf.mxu0  ;;  %1375 = vmatmul.mubr.bf16.gmra.mxu1 %v1139_v49 }
 0x247   : > { %v981_v43 = vadd.f32 %v980_v1, %v2466_v52  ;;  %v1093_v33 = vmax.f32 %v979_v26, 0.0 }
 0x248   : > { %v984_v35 = vpop.f32.mrf.mxu0 }
 0x249   : > { %v1094_v17 = vmax.f32 %v981_v43, 0.0  ;;  %v1141_v15 = vpack.c.bf16 %v1093_v33, %v1091_v32  ;;  %v985_v47 = vadd.f32 %v984_v35, %v2468_v55 }
 0x24a   : > { %v986_v45 = vpop.f32.mrf.mxu0 }
 0x24b   : > { %v1142_v0 = vpack.c.bf16 %v1094_v17, %v1092_v8  ;;  %v987_v18 = vadd.f32 %v986_v45, %v2466_v52  ;;  %v1095_v58 = vmax.f32 %v985_v47, 0.0 }
 0x24c   : > { %v988_v40 = vpop.f32.mrf.mxu0 }
 0x24d   : > { %v989_v36 = vadd.f32 %v988_v40, %v2468_v55  ;;  %1382 = vmatprep.mubr.bf16.mxu1 %v1142_v0  ;;  %v1096_v20 = vmax.f32 %v987_v18, 0.0 }
 0x24e   : > { %v990_v50 = vpop.f32.mrf.mxu0  ;;  %1383 = vmatmul.mubr.bf16.gmra.mxu1 %v1141_v15 }
 0x24f   : > { %v991_v22 = vadd.f32 %v990_v50, %v2466_v52  ;;  %v1097_v37 = vmax.f32 %v989_v36, 0.0 }
 0x250   : > { %v994_v38 = vpop.f32.mrf.mxu0 }
 0x251   : > { %v1098_v51 = vmax.f32 %v991_v22, 0.0  ;;  %v1143_v44 = vpack.c.bf16 %v1097_v37, %v1095_v58  ;;  %v995_v46 = vadd.f32 %v994_v38, %v2468_v55 }
 0x252   : > { %v996_v39 = vpop.f32.mrf.mxu0 }
 0x253   : > { %v1144_v56 = vpack.c.bf16 %v1098_v51, %v1096_v20  ;;  %v997_v9 = vadd.f32 %v996_v39, %v2466_v52  ;;  %v1099_v63 = vmax.f32 %v995_v46, 0.0 }
 0x254   : > { %v998_v57 = vpop.f32.mrf.mxu0 }
 0x255   : > { %v999_v25 = vadd.f32 %v998_v57, %v2468_v55  ;;  %1390 = vmatprep.mubr.bf16.mxu1 %v1144_v56  ;;  %v1100_v60 = vmax.f32 %v997_v9, 0.0 }
 0x256   : > { %v1000_v29 = vpop.f32.mrf.mxu0  ;;  %1391 = vmatmul.mubr.bf16.gmra.mxu1 %v1143_v44 }
 0x257   : > { %v1001_v14 = vadd.f32 %v1000_v29, %v2466_v52  ;;  %v1101_v48 = vmax.f32 %v999_v25, 0.0 }
 0x259   : > { %v1102_v27 = vmax.f32 %v1001_v14, 0.0  ;;  %v1145_v10 = vpack.c.bf16 %v1101_v48, %v1099_v63 }
 0x25b   : > { %v1146_v28 = vpack.c.bf16 %v1102_v27, %v1100_v60 }
 0x25d   : > { %1398 = vmatprep.mubr.bf16.mxu1 %v1146_v28 }
 0x25e   : > { %1399 = vmatmul.mubr.bf16.gmra.mxu1 %v1145_v10 }
 0x29b   : > { %v1004_v53 = vpop.f32.mrf.mxu0 }
 0x29c   : > { %v1005_v12 = vadd.f32 %v1004_v53, %v2468_v55 }
 0x29d   : > { %v1006_v54 = vpop.f32.mrf.mxu0 }
 0x29e   : > { %v1007_v62 = vadd.f32 %v1006_v54, %v2466_v52  ;;  %v1103_v4 = vmax.f32 %v1005_v12, 0.0 }
 0x29f   : > { %v1008_v59 = vpop.f32.mrf.mxu0 }
 0x2a0   : > { %v1009_v30 = vadd.f32 %v1008_v59, %v2468_v55  ;;  %v1104_v11 = vmax.f32 %v1007_v62, 0.0 }
 0x2a1   : > { %v1010_v3 = vpop.f32.mrf.mxu0 }
 0x2a2   : > { %v1011_v5 = vadd.f32 %v1010_v3, %v2466_v52  ;;  %v1105_v19 = vmax.f32 %v1009_v30, 0.0 }
 0x2a3   : > { %v1014_v42 = vpop.f32.mrf.mxu0 }
 0x2a4   : > { %v1106_v34 = vmax.f32 %v1011_v5, 0.0  ;;  %v1147_v13 = vpack.c.bf16 %v1105_v19, %v1103_v4  ;;  %v1015_v41 = vadd.f32 %v1014_v42, %v2468_v55 }
 0x2a5   : > { %v1016_v31 = vpop.f32.mrf.mxu0 }
 0x2a6   : > { %v1148_v61 = vpack.c.bf16 %v1106_v34, %v1104_v11  ;;  %v1017_v21 = vadd.f32 %v1016_v31, %v2466_v52  ;;  %v1107_v1 = vmax.f32 %v1015_v41, 0.0 }
 0x2a7   : > { %v1018_v7 = vpop.f32.mrf.mxu0 }
 0x2a8   : > { %v1019_v23 = vadd.f32 %v1018_v7, %v2468_v55  ;;  %1406 = vmatprep.mubr.bf16.mxu1 %v1148_v61  ;;  %v1108_v26 = vmax.f32 %v1017_v21, 0.0 }
 0x2a9   : > { %v1020_v6 = vpop.f32.mrf.mxu0  ;;  %1407 = vmatmul.mubr.bf16.gmra.mxu1 %v1147_v13 }
 0x2aa   : > { %v1021_v49 = vadd.f32 %v1020_v6, %v2466_v52  ;;  %v1109_v16 = vmax.f32 %v1019_v23, 0.0 }
 0x2ab   : > { %v1024_v24 = vpop.f32.mrf.mxu0 }
 0x2ac   : > { %v1110_v2 = vmax.f32 %v1021_v49, 0.0  ;;  %v1149_v35 = vpack.c.bf16 %v1109_v16, %v1107_v1  ;;  %v1025_v45 = vadd.f32 %v1024_v24, %v2468_v55  ;;  %v2537_v24 = vld [vmem:[%s2651_s6] ss:$0 sm:$0xff] }
 0x2ad   : > { %v1026_v43 = vpop.f32.mrf.mxu0 }
 0x2ae   : > { %v1150_v33 = vpack.c.bf16 %v1110_v2, %v1108_v26  ;;  %v1027_v17 = vadd.f32 %v1026_v43, %v2466_v52  ;;  %v1111_v50 = vmax.f32 %v1025_v45, 0.0 }
 0x2af   : > { %v1028_v8 = vpop.f32.mrf.mxu0 }
 0x2b0   : > { %v1029_v32 = vadd.f32 %v1028_v8, %v2468_v55  ;;  %1414 = vmatprep.mubr.bf16.mxu1 %v1150_v33  ;;  %v1112_v36 = vmax.f32 %v1027_v17, 0.0  ;;  %v1878_v8 = vld [vmem:[%s1975_s30] sm:$0xff] }
 0x2b1   : > { %v1030_v0 = vpop.f32.mrf.mxu0  ;;  %1415 = vmatmul.mubr.bf16.gmra.mxu1 %v1149_v35 }
 0x2b2   : > { %v1031_v15 = vadd.f32 %v1030_v0, %v2466_v52  ;;  %v1113_v40 = vmax.f32 %v1029_v32, 0.0 }
 0x2b3   : > { %v1034_v18 = vpop.f32.mrf.mxu0 }
 0x2b4   : > { %v1114_v47 = vmax.f32 %v1031_v15, 0.0  ;;  %v1151_v38 = vpack.c.bf16 %v1113_v40, %v1111_v50  ;;  %v1035_v39 = vadd.f32 %v1034_v18, %v2468_v55  ;;  %v1879_v18 = vld [vmem:[%s1975_s30 + $0x8] sm:$0xff] }
 0x2b5   : > { %v1036_v22 = vpop.f32.mrf.mxu0 }
 0x2b6   : > { %v1152_v37 = vpack.c.bf16 %v1114_v47, %v1112_v36  ;;  %v1037_v51 = vadd.f32 %v1036_v22, %v2466_v52  ;;  %v1115_v29 = vmax.f32 %v1035_v39, 0.0 }
 0x2b7   : > { %v1038_v20 = vpop.f32.mrf.mxu0 }
 0x2b8   : > { %v1039_v58 = vadd.f32 %v1038_v20, %v2468_v55  ;;  %1422 = vmatprep.mubr.bf16.mxu1 %v1152_v37  ;;  %v1116_v25 = vmax.f32 %v1037_v51, 0.0  ;;  %v1880_v20 = vld [vmem:[%s1975_s30 + $0x10] sm:$0xff] }
 0x2b9   : > { %v1040_v56 = vpop.f32.mrf.mxu0  ;;  %1423 = vmatmul.mubr.bf16.gmra.mxu1 %v1151_v38 }
 0x2ba   : > { %v1041_v44 = vadd.f32 %v1040_v56, %v2466_v52  ;;  %v1117_v57 = vmax.f32 %v1039_v58, 0.0 }
 0x2bb   : > { %v1044_v9 = vpop.f32.mrf.mxu0 }
 0x2bc   : > { %v1118_v46 = vmax.f32 %v1041_v44, 0.0  ;;  %v1153_v60 = vpack.c.bf16 %v1117_v57, %v1115_v29  ;;  %v1045_v10 = vadd.f32 %v1044_v9, %v2468_v55  ;;  %v1881_v9 = vld [vmem:[%s1975_s30 + $0x18] sm:$0xff] }
 0x2bd   : > { %v1046_v14 = vpop.f32.mrf.mxu0 }
 0x2be   : > { %v1154_v48 = vpack.c.bf16 %v1118_v46, %v1116_v25  ;;  %v1047_v63 = vadd.f32 %v1046_v14, %v2466_v52  ;;  %v1119_v3 = vmax.f32 %v1045_v10, 0.0 }
 0x2bf   : > { %v1048_v27 = vpop.f32.mrf.mxu0 }
 0x2c0   : > { %v1049_v28 = vadd.f32 %v1048_v27, %v2468_v55  ;;  %1430 = vmatprep.mubr.bf16.mxu1 %v1154_v48  ;;  %v1120_v30 = vmax.f32 %v1047_v63, 0.0  ;;  %v1882_v27 = vld [vmem:[%s1975_s30 + $0x20] sm:$0xff] }
 0x2c1   : > { %v1050_v53 = vpop.f32.mrf.mxu0  ;;  %1431 = vmatmul.mubr.bf16.gmra.mxu1 %v1153_v60 }
 0x2c2   : > { %v1051_v54 = vadd.f32 %v1050_v53, %v2466_v52  ;;  %v1121_v59 = vmax.f32 %v1049_v28, 0.0 }
 0x2c3   : > { %v1054_v62 = vpop.f32.mrf.mxu0 }
 0x2c4   : > { %v1122_v12 = vmax.f32 %v1051_v54, 0.0  ;;  %v1155_v42 = vpack.c.bf16 %v1121_v59, %v1119_v3  ;;  %v1055_v31 = vadd.f32 %v1054_v62, %v2468_v55  ;;  %v1883_v62 = vld [vmem:[%s1975_s30 + $0x28] sm:$0xff] }
 0x2c5   : > { %v1056_v5 = vpop.f32.mrf.mxu0 }
 0x2c6   : > { %v1156_v19 = vpack.c.bf16 %v1122_v12, %v1120_v30  ;;  %v1057_v34 = vadd.f32 %v1056_v5, %v2466_v52  ;;  %v1123_v41 = vmax.f32 %v1055_v31, 0.0 }
 0x2c7   : > { %v1058_v11 = vpop.f32.mrf.mxu0 }
 0x2c8   : > { %v1059_v4 = vadd.f32 %v1058_v11, %v2468_v55  ;;  %1438 = vmatprep.mubr.bf16.mxu1 %v1156_v19  ;;  %v1124_v21 = vmax.f32 %v1057_v34, 0.0  ;;  %v1884_v11 = vld [vmem:[%s1975_s30 + $0x30] sm:$0xff] }
 0x2c9   : > { %v1060_v61 = vpop.f32.mrf.mxu0  ;;  %1439 = vmatmul.mubr.bf16.gmra.mxu1 %v1155_v42 }
 0x2ca   : > { %v1061_v13 = vadd.f32 %v1060_v61, %v2466_v52  ;;  %v1125_v7 = vmax.f32 %v1059_v4, 0.0 }
 0x2cc   : > { %v1126_v23 = vmax.f32 %v1061_v13, 0.0  ;;  %v1157_v49 = vpack.c.bf16 %v1125_v7, %v1123_v41 }
 0x2ce   : > { %v1158_v6 = vpack.c.bf16 %v1126_v23, %v1124_v21  ;;  %v1885_v21 = vld [vmem:[%s1975_s30 + $0x38] sm:$0xff] }
 0x2d0   : > { %1446 = vmatprep.mubr.bf16.mxu1 %v1158_v6 }
 0x2d1   : > { %1447 = vmatmul.mubr.bf16.gmra.mxu1 %v1157_v49 }
 0x2d6   : > { %v1669_v16 = vpop.f32.mrf.mxu1 }
 0x2d8   : > { %v1670_v55 = vpop.f32.mrf.mxu1 }
 0x2d9   : > { %v1671_v26 = vadd.f32 %v1670_v55, %v1669_v16 }
 0x2da   : > { %v1672_v52 = vpop.f32.mrf.mxu1 }
 0x2db   : > { %v1329_v2 = vadd.f32 %v1671_v26, %v2537_v24  ;;  %v1886_v26 = vld [vmem:[%s1975_s30 + $0x40] sm:$0xff] }
 0x2dc   : > { %v1673_v1 = vpop.f32.mrf.mxu1 }
 0x2dd   : > { %v1455_v43 = vmax.f32 %v1329_v2, 0.0  ;;  %v1674_v33 = vadd.f32 %v1673_v1, %v1672_v52 }
 0x2de   : > { %v1675_v35 = vpop.f32.mrf.mxu1 }
 0x2df   : > { %v1487_v17 = vadd.f32 %v1878_v8, %v1455_v43  ;;  %v1332_v32 = vadd.f32 %v1674_v33, %v2537_v24  ;;  %v1887_v8 = vld [vmem:[%s1975_s30 + $0x48] sm:$0xff] }
 0x2e0   : > { %v1676_v45 = vpop.f32.mrf.mxu1 }
 0x2e1   : > { %1519 = vst [vmem:[%s2545_s28] sm:$0xff] %v1487_v17  ;;  %v1456_v0 = vmax.f32 %v1332_v32, 0.0  ;;  %v1677_v15 = vadd.f32 %v1676_v45, %v1675_v35 }
 0x2e2   : > { %v1678_v40 = vpop.f32.mrf.mxu1 }
 0x2e3   : > { %v1488_v36 = vadd.f32 %v1879_v18, %v1456_v0  ;;  %v1337_v47 = vadd.f32 %v1677_v15, %v2537_v24  ;;  %v1888_v18 = vld [vmem:[%s1975_s30 + $0x50] sm:$0xff] }
 0x2e4   : > { %v1679_v50 = vpop.f32.mrf.mxu1 }
 0x2e5   : > { %1520 = vst [vmem:[%s2545_s28 + $0x8] sm:$0xff] %v1488_v36  ;;  %v1457_v22 = vmax.f32 %v1337_v47, 0.0  ;;  %v1680_v37 = vadd.f32 %v1679_v50, %v1678_v40 }
 0x2e6   : > { %v1681_v38 = vpop.f32.mrf.mxu1 }
 0x2e7   : > { %v1489_v51 = vadd.f32 %v1880_v20, %v1457_v22  ;;  %v1340_v58 = vadd.f32 %v1680_v37, %v2537_v24  ;;  %v1889_v20 = vld [vmem:[%s1975_s30 + $0x58] sm:$0xff] }
 0x2e8   : > { %v1682_v39 = vpop.f32.mrf.mxu1 }
 0x2e9   : > { %1521 = vst [vmem:[%s2545_s28 + $0x10] sm:$0xff] %v1489_v51  ;;  %v1458_v56 = vmax.f32 %v1340_v58, 0.0  ;;  %v1683_v44 = vadd.f32 %v1682_v39, %v1681_v38 }
 0x2ea   : > { %v1684_v57 = vpop.f32.mrf.mxu1 }
 0x2eb   : > { %v1490_v25 = vadd.f32 %v1881_v9, %v1458_v56  ;;  %v1345_v46 = vadd.f32 %v1683_v44, %v2537_v24  ;;  %v1890_v9 = vld [vmem:[%s1975_s30 + $0x60] sm:$0xff] }
 0x2ec   : > { %v1685_v29 = vpop.f32.mrf.mxu1 }
 0x2ed   : > { %1522 = vst [vmem:[%s2545_s28 + $0x18] sm:$0xff] %v1490_v25  ;;  %v1459_v14 = vmax.f32 %v1345_v46, 0.0  ;;  %v1686_v48 = vadd.f32 %v1685_v29, %v1684_v57 }
 0x2ee   : > { %v1687_v60 = vpop.f32.mrf.mxu1 }
 0x2ef   : > { %v1491_v63 = vadd.f32 %v1882_v27, %v1459_v14  ;;  %v1348_v28 = vadd.f32 %v1686_v48, %v2537_v24  ;;  %v1891_v27 = vld [vmem:[%s1975_s30 + $0x68] sm:$0xff] }
 0x2f0   : > { %v1688_v10 = vpop.f32.mrf.mxu1 }
 0x2f1   : > { %1523 = vst [vmem:[%s2545_s28 + $0x20] sm:$0xff] %v1491_v63  ;;  %v1460_v53 = vmax.f32 %v1348_v28, 0.0  ;;  %v1689_v54 = vadd.f32 %v1688_v10, %v1687_v60 }
 0x2f2   : > { %v1690_v59 = vpop.f32.mrf.mxu1 }
 0x2f3   : > { %v1492_v30 = vadd.f32 %v1883_v62, %v1460_v53  ;;  %v1353_v12 = vadd.f32 %v1689_v54, %v2537_v24  ;;  %v1892_v62 = vld [vmem:[%s1975_s30 + $0x70] sm:$0xff] }
 0x2f4   : > { %v1691_v3 = vpop.f32.mrf.mxu1 }
 0x2f5   : > { %1524 = vst [vmem:[%s2545_s28 + $0x28] sm:$0xff] %v1492_v30  ;;  %v1461_v5 = vmax.f32 %v1353_v12, 0.0  ;;  %v1692_v19 = vadd.f32 %v1691_v3, %v1690_v59 }
 0x2f6   : > { %v1693_v42 = vpop.f32.mrf.mxu1 }
 0x2f7   : > { %v1493_v34 = vadd.f32 %v1884_v11, %v1461_v5  ;;  %v1356_v4 = vadd.f32 %v1692_v19, %v2537_v24  ;;  %v1893_v11 = vld [vmem:[%s1975_s30 + $0x78] sm:$0xff] }
 0x2f8   : > { %v1694_v31 = vpop.f32.mrf.mxu1 }
 0x2f9   : > { %1525 = vst [vmem:[%s2545_s28 + $0x30] sm:$0xff] %v1493_v34  ;;  %v1462_v61 = vmax.f32 %v1356_v4, 0.0  ;;  %v1695_v13 = vadd.f32 %v1694_v31, %v1693_v42 }
 0x2fa   : > { %v1696_v7 = vpop.f32.mrf.mxu1 }
 0x2fb   : > { %v1494_v23 = vadd.f32 %v1885_v21, %v1462_v61  ;;  %v1361_v41 = vadd.f32 %v1695_v13, %v2537_v24  ;;  %v1894_v21 = vld [vmem:[%s1975_s30 + $0x80] sm:$0xff] }
 0x2fc   : > { %v1697_v6 = vpop.f32.mrf.mxu1 }
 0x2fd   : > { %1526 = vst [vmem:[%s2545_s28 + $0x38] sm:$0xff] %v1494_v23  ;;  %v1463_v49 = vmax.f32 %v1361_v41, 0.0  ;;  %v1698_v16 = vadd.f32 %v1697_v6, %v1696_v7 }
 0x2fe   : > { %v1699_v55 = vpop.f32.mrf.mxu1 }
 0x2ff   : > { %v1495_v52 = vadd.f32 %v1886_v26, %v1463_v49  ;;  %v1364_v2 = vadd.f32 %v1698_v16, %v2537_v24  ;;  %v1895_v26 = vld [vmem:[%s1975_s30 + $0x88] sm:$0xff] }
 0x300   : > { %v1700_v1 = vpop.f32.mrf.mxu1 }
 0x301   : > { %1527 = vst [vmem:[%s2545_s28 + $0x40] sm:$0xff] %v1495_v52  ;;  %v1464_v43 = vmax.f32 %v1364_v2, 0.0  ;;  %v1701_v33 = vadd.f32 %v1700_v1, %v1699_v55 }
 0x302   : > { %v1702_v35 = vpop.f32.mrf.mxu1 }
 0x303   : > { %v1496_v17 = vadd.f32 %v1887_v8, %v1464_v43  ;;  %v1369_v32 = vadd.f32 %v1701_v33, %v2537_v24 }
 0x304   : > { %v1703_v45 = vpop.f32.mrf.mxu1 }
 0x305   : > { %1528 = vst [vmem:[%s2545_s28 + $0x48] sm:$0xff] %v1496_v17  ;;  %v1465_v0 = vmax.f32 %v1369_v32, 0.0  ;;  %v1704_v15 = vadd.f32 %v1703_v45, %v1702_v35  ;;  %v1896_v35 = vld [vmem:[%s1975_s30 + $0x90] sm:$0xff]  ;;  %v1897_v45 = vld [vmem:[%s1975_s30 + $0x98] sm:$0xff] }
 0x306   : > { %v1705_v40 = vpop.f32.mrf.mxu1 }
 0x307   : > { %v1497_v36 = vadd.f32 %v1888_v18, %v1465_v0  ;;  %v1372_v47 = vadd.f32 %v1704_v15, %v2537_v24 }
 0x308   : > { %v1706_v50 = vpop.f32.mrf.mxu1 }
 0x309   : > { %1529 = vst [vmem:[%s2545_s28 + $0x50] sm:$0xff] %v1497_v36  ;;  %v1466_v22 = vmax.f32 %v1372_v47, 0.0  ;;  %v1707_v37 = vadd.f32 %v1706_v50, %v1705_v40 }
 0x30a   : > { %v1708_v38 = vpop.f32.mrf.mxu1 }
 0x30b   : > { %v1498_v51 = vadd.f32 %v1889_v20, %v1466_v22  ;;  %v1377_v58 = vadd.f32 %v1707_v37, %v2537_v24  ;;  %v1898_v20 = vld [vmem:[%s1975_s30 + $0xa0] sm:$0xff] }
 0x30c   : > { %v1709_v39 = vpop.f32.mrf.mxu1 }
 0x30d   : > { %1530 = vst [vmem:[%s2545_s28 + $0x58] sm:$0xff] %v1498_v51  ;;  %v1467_v56 = vmax.f32 %v1377_v58, 0.0  ;;  %v1710_v44 = vadd.f32 %v1709_v39, %v1708_v38 }
 0x30e   : > { %v1711_v57 = vpop.f32.mrf.mxu1 }
 0x30f   : > { %v1499_v25 = vadd.f32 %v1890_v9, %v1467_v56  ;;  %v1380_v46 = vadd.f32 %v1710_v44, %v2537_v24  ;;  %v1899_v9 = vld [vmem:[%s1975_s30 + $0xa8] sm:$0xff] }
 0x310   : > { %v1712_v29 = vpop.f32.mrf.mxu1 }
 0x311   : > { %1531 = vst [vmem:[%s2545_s28 + $0x60] sm:$0xff] %v1499_v25  ;;  %v1468_v14 = vmax.f32 %v1380_v46, 0.0  ;;  %v1713_v48 = vadd.f32 %v1712_v29, %v1711_v57 }
 0x312   : > { %v1714_v60 = vpop.f32.mrf.mxu1 }
 0x313   : > { %v1500_v63 = vadd.f32 %v1891_v27, %v1468_v14  ;;  %v1385_v28 = vadd.f32 %v1713_v48, %v2537_v24  ;;  %v1900_v27 = vld [vmem:[%s1975_s30 + $0xb0] sm:$0xff] }
 0x314   : > { %v1715_v10 = vpop.f32.mrf.mxu1 }
 0x315   : > { %1532 = vst [vmem:[%s2545_s28 + $0x68] sm:$0xff] %v1500_v63  ;;  %v1469_v53 = vmax.f32 %v1385_v28, 0.0  ;;  %v1716_v54 = vadd.f32 %v1715_v10, %v1714_v60 }
 0x316   : > { %v1717_v59 = vpop.f32.mrf.mxu1 }
 0x317   : > { %v1501_v30 = vadd.f32 %v1892_v62, %v1469_v53  ;;  %v1388_v12 = vadd.f32 %v1716_v54, %v2537_v24  ;;  %v1901_v62 = vld [vmem:[%s1975_s30 + $0xb8] sm:$0xff] }
 0x318   : > { %v1718_v3 = vpop.f32.mrf.mxu1 }
 0x319   : > { %1533 = vst [vmem:[%s2545_s28 + $0x70] sm:$0xff] %v1501_v30  ;;  %v1470_v5 = vmax.f32 %v1388_v12, 0.0  ;;  %v1719_v19 = vadd.f32 %v1718_v3, %v1717_v59 }
 0x31a   : > { %v1720_v42 = vpop.f32.mrf.mxu1 }
 0x31b   : > { %v1502_v34 = vadd.f32 %v1893_v11, %v1470_v5  ;;  %v1393_v4 = vadd.f32 %v1719_v19, %v2537_v24  ;;  %v1902_v11 = vld [vmem:[%s1975_s30 + $0xc0] sm:$0xff] }
 0x31c   : > { %v1721_v31 = vpop.f32.mrf.mxu1 }
 0x31d   : > { %1534 = vst [vmem:[%s2545_s28 + $0x78] sm:$0xff] %v1502_v34  ;;  %v1471_v61 = vmax.f32 %v1393_v4, 0.0  ;;  %v1722_v13 = vadd.f32 %v1721_v31, %v1720_v42 }
 0x31e   : > { %v1723_v7 = vpop.f32.mrf.mxu1 }
 0x31f   : > { %v1503_v23 = vadd.f32 %v1894_v21, %v1471_v61  ;;  %v1396_v41 = vadd.f32 %v1722_v13, %v2537_v24  ;;  %v1903_v21 = vld [vmem:[%s1975_s30 + $0xc8] sm:$0xff] }
 0x320   : > { %v1724_v6 = vpop.f32.mrf.mxu1 }
 0x321   : > { %1535 = vst [vmem:[%s2545_s28 + $0x80] sm:$0xff] %v1503_v23  ;;  %v1472_v49 = vmax.f32 %v1396_v41, 0.0  ;;  %v1725_v16 = vadd.f32 %v1724_v6, %v1723_v7 }
 0x322   : > { %v1726_v55 = vpop.f32.mrf.mxu1 }
 0x323   : > { %v1504_v52 = vadd.f32 %v1895_v26, %v1472_v49  ;;  %v1401_v2 = vadd.f32 %v1725_v16, %v2537_v24  ;;  %v1904_v26 = vld [vmem:[%s1975_s30 + $0xd0] sm:$0xff] }
 0x324   : > { %v1727_v1 = vpop.f32.mrf.mxu1 }
 0x325   : > { %1536 = vst [vmem:[%s2545_s28 + $0x88] sm:$0xff] %v1504_v52  ;;  %v1473_v43 = vmax.f32 %v1401_v2, 0.0  ;;  %v1728_v33 = vadd.f32 %v1727_v1, %v1726_v55 }
 0x327   : > { %v1505_v8 = vadd.f32 %v1896_v35, %v1473_v43  ;;  %v1404_v17 = vadd.f32 %v1728_v33, %v2537_v24 }
 0x329   : > { %1537 = vst [vmem:[%s2545_s28 + $0x90] sm:$0xff] %v1505_v8  ;;  %v1474_v32 = vmax.f32 %v1404_v17, 0.0  ;;  %v1905_v8 = vld [vmem:[%s1975_s30 + $0xd8] sm:$0xff] }
 0x32b   : > { %v1506_v0 = vadd.f32 %v1897_v45, %v1474_v32 }
 0x32d   : > { %1538 = vst [vmem:[%s2545_s28 + $0x98] sm:$0xff] %v1506_v0 }
 0x369   : > { %v1729_v15 = vpop.f32.mrf.mxu1 }
 0x36b   : > { %v1730_v40 = vpop.f32.mrf.mxu1 }
 0x36c   : > { %v1731_v18 = vadd.f32 %v1730_v40, %v1729_v15 }
 0x36d   : > { %v1732_v36 = vpop.f32.mrf.mxu1 }
 0x36e   : > { %v1409_v47 = vadd.f32 %v1731_v18, %v2537_v24  ;;  %v1906_v18 = vld [vmem:[%s1975_s30 + $0xe0] sm:$0xff] }
 0x36f   : > { %v1733_v50 = vpop.f32.mrf.mxu1 }
 0x370   : > { %v1475_v22 = vmax.f32 %v1409_v47, 0.0  ;;  %v1734_v37 = vadd.f32 %v1733_v50, %v1732_v36 }
 0x371   : > { %v1735_v38 = vpop.f32.mrf.mxu1 }
 0x372   : > { %v1507_v51 = vadd.f32 %v1898_v20, %v1475_v22  ;;  %v1412_v58 = vadd.f32 %v1734_v37, %v2537_v24  ;;  %v1907_v20 = vld [vmem:[%s1975_s30 + $0xe8] sm:$0xff] }
 0x373   : > { %v1736_v39 = vpop.f32.mrf.mxu1 }
 0x374   : > { %1539 = vst [vmem:[%s2545_s28 + $0xa0] sm:$0xff] %v1507_v51  ;;  %v1476_v56 = vmax.f32 %v1412_v58, 0.0  ;;  %v1737_v44 = vadd.f32 %v1736_v39, %v1735_v38 }
 0x375   : > { %v1738_v57 = vpop.f32.mrf.mxu1 }
 0x376   : > { %v1508_v25 = vadd.f32 %v1899_v9, %v1476_v56  ;;  %v1417_v46 = vadd.f32 %v1737_v44, %v2537_v24 }
 0x377   : > { %v1739_v29 = vpop.f32.mrf.mxu1 }
 0x378   : > { %1540 = vst [vmem:[%s2545_s28 + $0xa8] sm:$0xff] %v1508_v25  ;;  %v1477_v14 = vmax.f32 %v1417_v46, 0.0  ;;  %v1740_v48 = vadd.f32 %v1739_v29, %v1738_v57  ;;  %v1908_v57 = vld [vmem:[%s1975_s30 + $0xf0] sm:$0xff]  ;;  %v1909_v29 = vld [vmem:[%s1975_s30 + $0xf8] sm:$0xff] }
 0x379   : > { %v1741_v60 = vpop.f32.mrf.mxu1 }
 0x37a   : > { %v1509_v63 = vadd.f32 %v1900_v27, %v1477_v14  ;;  %v1420_v28 = vadd.f32 %v1740_v48, %v2537_v24 }
 0x37b   : > { %v1742_v10 = vpop.f32.mrf.mxu1 }
 0x37c   : > { %1541 = vst [vmem:[%s2545_s28 + $0xb0] sm:$0xff] %v1509_v63  ;;  %v1478_v53 = vmax.f32 %v1420_v28, 0.0  ;;  %v1743_v54 = vadd.f32 %v1742_v10, %v1741_v60 }
 0x37d   : > { %v1744_v59 = vpop.f32.mrf.mxu1 }
 0x37e   : > { %v1510_v30 = vadd.f32 %v1901_v62, %v1478_v53  ;;  %v1425_v12 = vadd.f32 %v1743_v54, %v2537_v24 }
 0x37f   : > { %v1745_v3 = vpop.f32.mrf.mxu1 }
 0x380   : > { %1542 = vst [vmem:[%s2545_s28 + $0xb8] sm:$0xff] %v1510_v30  ;;  %v1479_v5 = vmax.f32 %v1425_v12, 0.0  ;;  %v1746_v19 = vadd.f32 %v1745_v3, %v1744_v59 }
 0x381   : > { %v1747_v42 = vpop.f32.mrf.mxu1 }
 0x382   : > { %v1511_v34 = vadd.f32 %v1902_v11, %v1479_v5  ;;  %v1428_v4 = vadd.f32 %v1746_v19, %v2537_v24 }
 0x383   : > { %v1748_v31 = vpop.f32.mrf.mxu1 }
 0x384   : > { %1543 = vst [vmem:[%s2545_s28 + $0xc0] sm:$0xff] %v1511_v34  ;;  %v1480_v61 = vmax.f32 %v1428_v4, 0.0  ;;  %v1749_v13 = vadd.f32 %v1748_v31, %v1747_v42 }
 0x385   : > { %v1750_v7 = vpop.f32.mrf.mxu1 }
 0x386   : > { %v1512_v23 = vadd.f32 %v1903_v21, %v1480_v61  ;;  %v1433_v41 = vadd.f32 %v1749_v13, %v2537_v24 }
 0x387   : > { %v1751_v6 = vpop.f32.mrf.mxu1 }
 0x388   : > { %1544 = vst [vmem:[%s2545_s28 + $0xc8] sm:$0xff] %v1512_v23  ;;  %v1481_v49 = vmax.f32 %v1433_v41, 0.0  ;;  %v1752_v16 = vadd.f32 %v1751_v6, %v1750_v7 }
 0x389   : > { %v1753_v55 = vpop.f32.mrf.mxu1 }
 0x38a   : > { %v1513_v52 = vadd.f32 %v1904_v26, %v1481_v49  ;;  %v1436_v2 = vadd.f32 %v1752_v16, %v2537_v24 }
 0x38b   : > { %v1754_v1 = vpop.f32.mrf.mxu1 }
 0x38c   : > { %1545 = vst [vmem:[%s2545_s28 + $0xd0] sm:$0xff] %v1513_v52  ;;  %v1482_v43 = vmax.f32 %v1436_v2, 0.0  ;;  %v1755_v33 = vadd.f32 %v1754_v1, %v1753_v55 }
 0x38d   : > { %v1756_v35 = vpop.f32.mrf.mxu1 }
 0x38e   : > { %v1514_v17 = vadd.f32 %v1905_v8, %v1482_v43  ;;  %v1441_v32 = vadd.f32 %v1755_v33, %v2537_v24 }
 0x38f   : > { %v1757_v45 = vpop.f32.mrf.mxu1 }
 0x390   : > { %1546 = vst [vmem:[%s2545_s28 + $0xd8] sm:$0xff] %v1514_v17  ;;  %v1483_v0 = vmax.f32 %v1441_v32, 0.0  ;;  %v1758_v15 = vadd.f32 %v1757_v45, %v1756_v35 }
 0x391   : > { %v1759_v40 = vpop.f32.mrf.mxu1 }
 0x392   : > { %v1515_v36 = vadd.f32 %v1906_v18, %v1483_v0  ;;  %v1444_v47 = vadd.f32 %v1758_v15, %v2537_v24 }
 0x393   : > { %v1760_v50 = vpop.f32.mrf.mxu1 }
 0x394   : > { %1547 = vst [vmem:[%s2545_s28 + $0xe0] sm:$0xff] %v1515_v36  ;;  %v1484_v22 = vmax.f32 %v1444_v47, 0.0  ;;  %v1761_v37 = vadd.f32 %v1760_v50, %v1759_v40 }
 0x395   : > { %v1762_v38 = vpop.f32.mrf.mxu1 }
 0x396   : > { %v1516_v51 = vadd.f32 %v1907_v20, %v1484_v22  ;;  %v1449_v58 = vadd.f32 %v1761_v37, %v2537_v24 }
 0x397   : > { %v1763_v39 = vpop.f32.mrf.mxu1 }
 0x398   : > { %1548 = vst [vmem:[%s2545_s28 + $0xe8] sm:$0xff] %v1516_v51  ;;  %v1485_v56 = vmax.f32 %v1449_v58, 0.0  ;;  %v1764_v44 = vadd.f32 %v1763_v39, %v1762_v38 }
 0x39a   : > { %v1517_v9 = vadd.f32 %v1908_v57, %v1485_v56  ;;  %v1452_v25 = vadd.f32 %v1764_v44, %v2537_v24 }
 0x39c   : > { %1549 = vst [vmem:[%s2545_s28 + $0xf0] sm:$0xff] %v1517_v9  ;;  %v1486_v46 = vmax.f32 %v1452_v25, 0.0 }
 0x39e   : > { %v1518_v14 = vadd.f32 %v1909_v29, %v1486_v46 }
 0x3a0   : > { %1550 = vst [vmem:[%s2545_s28 + $0xf8] sm:$0xff] %v1518_v14 }
 0x3a1 PF: > { %s17_s24 = sadd.s32 1, %s1916_s24  }
 0x3a2   : > { %p14_p4 = scmp.ge.s32.totalorder %s17_s24, 6  }
 0x3a4   :  { %16 = sbr.rel (!%p14_p4) target bundleno = 1 (0x1), region = 78 }

</bundles_post_ra>
